<compile_context>
chip_gen: v5e
topology: v5e:2x2
jax: 0.10.0
libtpu: 0.0.40
codegen_flags: <defaults>
</compile_context>

<pallas_src>
import jax
import jax.numpy as jnp
from jax.experimental import pallas as pl
from jax.experimental.pallas import tpu as pltpu


def _prelu(x, a):
    return jnp.where(x > 0, x, a * x)


def mlp_block_kernel(
    x_ref,
    w_in_ref, b_in_ref,
    w1_ref, b1_ref,
    ln_g_ref, ln_b_ref,
    a1_ref,
    w2_ref, b2_ref,
    w_out_ref, b_out_ref,
    a2_ref,
    o_ref,
):
    # PReLU slopes live in SMEM; read once per grid step.
    a1 = a1_ref[0, 0]
    a2 = a2_ref[0, 0]

    x = x_ref[...]                                               # [TILE_N, in_dim] bf16

    # ---- in_proj (bf16 MXU inputs, f32 accumulation) ----
    h = jnp.dot(x, w_in_ref[...], preferred_element_type=jnp.float32) + b_in_ref[...]

    # ---- residual MLP: Linear -> LayerNorm -> PReLU -> Linear, plus skip ----
    res = h
    y = jnp.dot(h.astype(jnp.bfloat16), w1_ref[...],
                preferred_element_type=jnp.float32) + b1_ref[...]

    mean = jnp.mean(y, axis=-1, keepdims=True)
    var = jnp.mean((y - mean) ** 2, axis=-1, keepdims=True)      # biased var (PyTorch LN)
    y = (y - mean) * jax.lax.rsqrt(var + 1e-5) * ln_g_ref[...] + ln_b_ref[...]
    y = _prelu(y, a1)

    y = jnp.dot(y.astype(jnp.bfloat16), w2_ref[...],
                preferred_element_type=jnp.float32) + b2_ref[...]
    h = y + res

    # ---- out_proj + final PReLU ----
    o = jnp.dot(h.astype(jnp.bfloat16), w_out_ref[...],
                preferred_element_type=jnp.float32) + b_out_ref[...]
    o_ref[...] = _prelu(o, a2)


def mlp_block(x, params, *, tile_n=128):
    N, in_dim = x.shape
    hidden = params["w1"].shape[0]
    out_dim = params["w_out"].shape[1]

    # Pad rows so the grid tiles evenly.  All row-wise ops (LayerNorm, PReLU)
    # are independent per row, so padded zero rows are benign and sliced off.
    n_pad = pl.cdiv(N, tile_n) * tile_n
    x_p = x.astype(jnp.bfloat16)
    if n_pad != N:
        x_p = jnp.pad(x_p, ((0, n_pad - N), (0, 0)))
    grid = (n_pad // tile_n,)

    def resident(shape):
        # Whole-array block with a constant index_map -> fetched once, then
        # resident in VMEM for every grid step.
        return pl.BlockSpec(shape, lambda i: (0, 0))

    smem = pl.BlockSpec(memory_space=pltpu.MemorySpace.SMEM)     # PReLU scalars

    in_specs = [
        pl.BlockSpec((tile_n, in_dim), lambda i: (i, 0)),        # x tile (pipelined)
        resident((in_dim, hidden)), resident((1, hidden)),       # w_in, b_in
        resident((hidden, hidden)), resident((1, hidden)),       # w1, b1
        resident((1, hidden)), resident((1, hidden)),            # ln_g, ln_b
        smem,                                                    # a1
        resident((hidden, hidden)), resident((1, hidden)),       # w2, b2
        resident((hidden, out_dim)), resident((1, out_dim)),     # w_out, b_out
        smem,                                                    # a2
    ]
    out_specs = pl.BlockSpec((tile_n, out_dim), lambda i: (i, 0))

    # VMEM budget: resident bf16 weights + double-buffered x (bf16) / o (f32)
    # tiles + live f32 intermediates, with 2x margin; clamp to sane bounds.
    weight_bytes = 2 * (in_dim * hidden + 2 * hidden * hidden + hidden * out_dim)
    io_bytes = 2 * (tile_n * in_dim * 2 + tile_n * out_dim * 4)
    interm_bytes = 6 * tile_n * hidden * 4
    vmem_limit = int(min(max(2 * (weight_bytes + io_bytes + interm_bytes),
                             8 * 1024 * 1024), 100 * 1024 * 1024))

    flops = 2 * n_pad * (in_dim * hidden + 2 * hidden * hidden + hidden * out_dim)
    bias_bytes = 4 * (5 * hidden + out_dim) + 8                  # biases + LN params + PReLU
    bytes_accessed = x_p.size * 2 + n_pad * out_dim * 4 + weight_bytes + bias_bytes
    cost = pl.CostEstimate(flops=flops, transcendentals=n_pad,
                           bytes_accessed=bytes_accessed)

    out = pl.pallas_call(
        mlp_block_kernel,
        out_shape=jax.ShapeDtypeStruct((n_pad, out_dim), jnp.float32),
        grid=grid,
        in_specs=in_specs,
        out_specs=out_specs,
        compiler_params=pltpu.CompilerParams(
            dimension_semantics=("parallel",),
            vmem_limit_bytes=vmem_limit,
        ),
        cost_estimate=cost,
    )(
        x_p,
        params["w_in"], params["b_in"],
        params["w1"], params["b1"],
        params["ln_g"], params["ln_b"],
        params["a1"],
        params["w2"], params["b2"],
        params["w_out"], params["b_out"],
        params["a2"],
    )
    return out[:N] if n_pad != N else out


def init_params(key, in_dim, hidden_dim, out_dim):
    """Deterministic synthetic init mimicking nn.Linear / LayerNorm / PReLU defaults.

    Weights stored bf16 (MXU inputs); biases / LN params / PReLU slopes stay f32.
    """
    ks = jax.random.split(key, 8)

    def linear(kw, kb, fan_in, fan_out):
        bound = 1.0 / jnp.sqrt(fan_in)
        w = jax.random.uniform(kw, (fan_in, fan_out), jnp.float32, -bound, bound)
        b = jax.random.uniform(kb, (1, fan_out), jnp.float32, -bound, bound)
        return w.astype(jnp.bfloat16), b

    w_in, b_in = linear(ks[0], ks[1], in_dim, hidden_dim)
    w1, b1 = linear(ks[2], ks[3], hidden_dim, hidden_dim)
    w2, b2 = linear(ks[4], ks[5], hidden_dim, hidden_dim)
    w_out, b_out = linear(ks[6], ks[7], hidden_dim, out_dim)

    return {
        "w_in": w_in, "b_in": b_in,
        "w1": w1, "b1": b1,
        "ln_g": jnp.ones((1, hidden_dim), jnp.float32),
        "ln_b": jnp.zeros((1, hidden_dim), jnp.float32),
        "a1": jnp.full((1, 1), 0.25, jnp.float32),   # PReLU inside res_mlp
        "w2": w2, "b2": b2,
        "w_out": w_out, "b_out": b_out,
        "a2": jnp.full((1, 1), 0.25, jnp.float32),   # self.act PReLU
    }


def mlp_block_ref(x, p):
    """Pure-JAX reference of the PyTorch forward (same bf16-in / f32-acc matmul precision)."""
    def dot(a, w):
        return jnp.dot(a.astype(jnp.bfloat16), w.astype(jnp.bfloat16),
                       preferred_element_type=jnp.float32)

    h = dot(x, p["w_in"]) + p["b_in"]
    res = h
    y = dot(h, p["w1"]) + p["b1"]
    mean = jnp.mean(y, -1, keepdims=True)
    var = jnp.mean((y - mean) ** 2, -1, keepdims=True)
    y = (y - mean) * jax.lax.rsqrt(var + 1e-5) * p["ln_g"] + p["ln_b"]
    y = jnp.where(y > 0, y, p["a1"][0, 0] * y)
    y = dot(y, p["w2"]) + p["b2"]
    h = y + res
    o = dot(h, p["w_out"]) + p["b_out"]
    return jnp.where(o > 0, o, p["a2"][0, 0] * o)


if __name__ == "__main__":
    # Lane-dense feature dims (multiples of 128) and enough rows for 2 grid steps
    # (exercises the pipeline and, on v7x, both TensorCores).
    N, IN_DIM, HIDDEN, OUT_DIM = 256, 128, 128, 128

    key = jax.random.PRNGKey(0)
    kx, kp = jax.random.split(key)
    x = jax.random.normal(kx, (N, IN_DIM), jnp.float32)
    params = init_params(kp, IN_DIM, HIDDEN, OUT_DIM)

    out = mlp_block(x, params, tile_n=128)
    out = jax.block_until_ready(out)

    ref = mlp_block_ref(x, params)
    assert out.shape == (N, OUT_DIM)
    assert jnp.allclose(out, ref, atol=5e-2, rtol=5e-2), "mismatch vs reference"

    print("KERNEL_OK")
</pallas_src>

<mosaic_0001>
module attributes {stable_mosaic.version = 11 : i64} {
  func.func @mlp_block_kernel(%arg0: i32, %arg1: memref<128x128xbf16, #tpu.memory_space<vmem>>, %arg2: memref<128x128xbf16, #tpu.memory_space<vmem>>, %arg3: memref<1x128xf32, #tpu.memory_space<vmem>>, %arg4: memref<128x128xbf16, #tpu.memory_space<vmem>>, %arg5: memref<1x128xf32, #tpu.memory_space<vmem>>, %arg6: memref<1x128xf32, #tpu.memory_space<vmem>>, %arg7: memref<1x128xf32, #tpu.memory_space<vmem>>, %arg8: memref<1x1xf32, #tpu.memory_space<smem>>, %arg9: memref<128x128xbf16, #tpu.memory_space<vmem>>, %arg10: memref<1x128xf32, #tpu.memory_space<vmem>>, %arg11: memref<128x128xbf16, #tpu.memory_space<vmem>>, %arg12: memref<1x128xf32, #tpu.memory_space<vmem>>, %arg13: memref<1x1xf32, #tpu.memory_space<smem>>, %arg14: memref<128x128xf32, #tpu.memory_space<vmem>>) attributes {dimension_semantics = [#tpu.dimension_semantics<parallel>], iteration_bounds = array<i64: 2>, scalar_prefetch = 0 : i64, scratch_operands = 0 : i64, tpu.core_type = #tpu.core_type<tc>, window_params = [{transform_indices = @transform_0, window_bounds = array<i64: 128, 128>}, {pipeline_mode = #tpu.pipeline_mode<synchronous>, transform_indices = @transform_1, window_bounds = array<i64: 128, 128>}, {pipeline_mode = #tpu.pipeline_mode<synchronous>, transform_indices = @transform_2, window_bounds = array<i64: 1, 128>}, {pipeline_mode = #tpu.pipeline_mode<synchronous>, transform_indices = @transform_3, window_bounds = array<i64: 128, 128>}, {pipeline_mode = #tpu.pipeline_mode<synchronous>, transform_indices = @transform_4, window_bounds = array<i64: 1, 128>}, {pipeline_mode = #tpu.pipeline_mode<synchronous>, transform_indices = @transform_5, window_bounds = array<i64: 1, 128>}, {pipeline_mode = #tpu.pipeline_mode<synchronous>, transform_indices = @transform_6, window_bounds = array<i64: 1, 128>}, {transform_indices = @transform_7, window_bounds = array<i64: 1, 1>}, {pipeline_mode = #tpu.pipeline_mode<synchronous>, transform_indices = @transform_8, window_bounds = array<i64: 128, 128>}, {pipeline_mode = #tpu.pipeline_mode<synchronous>, transform_indices = @transform_9, window_bounds = array<i64: 1, 128>}, {pipeline_mode = #tpu.pipeline_mode<synchronous>, transform_indices = @transform_10, window_bounds = array<i64: 128, 128>}, {pipeline_mode = #tpu.pipeline_mode<synchronous>, transform_indices = @transform_11, window_bounds = array<i64: 1, 128>}, {transform_indices = @transform_12, window_bounds = array<i64: 1, 1>}, {transform_indices = @transform_13, window_bounds = array<i64: 128, 128>}]} {
    %c0 = arith.constant 0 : index
    %c0_0 = arith.constant 0 : index
    %0 = memref.load %arg8[%c0, %c0_0] : memref<1x1xf32, #tpu.memory_space<smem>>
    %c0_1 = arith.constant 0 : index
    %c0_2 = arith.constant 0 : index
    %1 = memref.load %arg13[%c0_1, %c0_2] : memref<1x1xf32, #tpu.memory_space<smem>>
    %c0_3 = arith.constant 0 : index
    %c0_4 = arith.constant 0 : index
    %2 = vector.load %arg1[%c0_3, %c0_4] : memref<128x128xbf16, #tpu.memory_space<vmem>>, vector<128x128xbf16>
    %c0_5 = arith.constant 0 : index
    %c0_6 = arith.constant 0 : index
    %3 = vector.load %arg2[%c0_5, %c0_6] : memref<128x128xbf16, #tpu.memory_space<vmem>>, vector<128x128xbf16>
    %cst = arith.constant dense<0.000000e+00> : vector<128x128xf32>
    %4 = tpu.matmul %2, %3, %cst {dimension_numbers = #tpu.dot_dimension_numbers<[1], [0], [0], [1], [0, 0, 1, 1], [], []>} : vector<128x128xbf16>, vector<128x128xbf16>, vector<128x128xf32> -> vector<128x128xf32>
    %c0_7 = arith.constant 0 : index
    %c0_8 = arith.constant 0 : index
    %5 = vector.load %arg3[%c0_7, %c0_8] : memref<1x128xf32, #tpu.memory_space<vmem>>, vector<1x128xf32>
    %6 = vector.broadcast %5 : vector<1x128xf32> to vector<128x128xf32>
    %7 = arith.addf %4, %6 : vector<128x128xf32>
    %8 = arith.truncf %7 : vector<128x128xf32> to vector<128x128xbf16>
    %c0_9 = arith.constant 0 : index
    %c0_10 = arith.constant 0 : index
    %9 = vector.load %arg4[%c0_9, %c0_10] : memref<128x128xbf16, #tpu.memory_space<vmem>>, vector<128x128xbf16>
    %cst_11 = arith.constant dense<0.000000e+00> : vector<128x128xf32>
    %10 = tpu.matmul %8, %9, %cst_11 {dimension_numbers = #tpu.dot_dimension_numbers<[1], [0], [0], [1], [0, 0, 1, 1], [], []>} : vector<128x128xbf16>, vector<128x128xbf16>, vector<128x128xf32> -> vector<128x128xf32>
    %c0_12 = arith.constant 0 : index
    %c0_13 = arith.constant 0 : index
    %11 = vector.load %arg5[%c0_12, %c0_13] : memref<1x128xf32, #tpu.memory_space<vmem>>, vector<1x128xf32>
    %12 = vector.broadcast %11 : vector<1x128xf32> to vector<128x128xf32>
    %13 = arith.addf %10, %12 : vector<128x128xf32>
    %cst_14 = arith.constant dense<0.000000e+00> : vector<128xf32>
    %14 = vector.multi_reduction <add>, %13, %cst_14 [1] : vector<128x128xf32> to vector<128xf32>
    %15 = vector.shape_cast %14 : vector<128xf32> to vector<128x1xf32>
    %cst_15 = arith.constant 1.280000e+02 : f32
    %16 = vector.broadcast %cst_15 : f32 to vector<128x1xf32>
    %17 = arith.divf %15, %16 : vector<128x1xf32>
    %18 = vector.broadcast %17 : vector<128x1xf32> to vector<128x128xf32>
    %19 = arith.subf %13, %18 : vector<128x128xf32>
    %20 = arith.mulf %19, %19 : vector<128x128xf32>
    %cst_16 = arith.constant dense<0.000000e+00> : vector<128xf32>
    %21 = vector.multi_reduction <add>, %20, %cst_16 [1] : vector<128x128xf32> to vector<128xf32>
    %22 = vector.shape_cast %21 : vector<128xf32> to vector<128x1xf32>
    %cst_17 = arith.constant 1.280000e+02 : f32
    %23 = vector.broadcast %cst_17 : f32 to vector<128x1xf32>
    %24 = arith.divf %22, %23 : vector<128x1xf32>
    %25 = vector.broadcast %17 : vector<128x1xf32> to vector<128x128xf32>
    %26 = arith.subf %13, %25 : vector<128x128xf32>
    %cst_18 = arith.constant 9.99999974E-6 : f32
    %27 = vector.broadcast %cst_18 : f32 to vector<128x1xf32>
    %28 = arith.addf %24, %27 : vector<128x1xf32>
    %29 = math.rsqrt %28 : vector<128x1xf32>
    %30 = vector.broadcast %29 : vector<128x1xf32> to vector<128x128xf32>
    %31 = arith.mulf %26, %30 : vector<128x128xf32>
    %c0_19 = arith.constant 0 : index
    %c0_20 = arith.constant 0 : index
    %32 = vector.load %arg6[%c0_19, %c0_20] : memref<1x128xf32, #tpu.memory_space<vmem>>, vector<1x128xf32>
    %33 = vector.broadcast %32 : vector<1x128xf32> to vector<128x128xf32>
    %34 = arith.mulf %31, %33 : vector<128x128xf32>
    %c0_21 = arith.constant 0 : index
    %c0_22 = arith.constant 0 : index
    %35 = vector.load %arg7[%c0_21, %c0_22] : memref<1x128xf32, #tpu.memory_space<vmem>>, vector<1x128xf32>
    %36 = vector.broadcast %35 : vector<1x128xf32> to vector<128x128xf32>
    %37 = arith.addf %34, %36 : vector<128x128xf32>
    %cst_23 = arith.constant 0.000000e+00 : f32
    %38 = vector.broadcast %cst_23 : f32 to vector<128x128xf32>
    %39 = arith.cmpf ogt, %37, %38 : vector<128x128xf32>
    %40 = vector.broadcast %0 : f32 to vector<128x128xf32>
    %41 = arith.mulf %40, %37 : vector<128x128xf32>
    %42 = arith.select %39, %37, %41 : vector<128x128xi1>, vector<128x128xf32>
    %43 = arith.truncf %42 : vector<128x128xf32> to vector<128x128xbf16>
    %c0_24 = arith.constant 0 : index
    %c0_25 = arith.constant 0 : index
    %44 = vector.load %arg9[%c0_24, %c0_25] : memref<128x128xbf16, #tpu.memory_space<vmem>>, vector<128x128xbf16>
    %cst_26 = arith.constant dense<0.000000e+00> : vector<128x128xf32>
    %45 = tpu.matmul %43, %44, %cst_26 {dimension_numbers = #tpu.dot_dimension_numbers<[1], [0], [0], [1], [0, 0, 1, 1], [], []>} : vector<128x128xbf16>, vector<128x128xbf16>, vector<128x128xf32> -> vector<128x128xf32>
    %c0_27 = arith.constant 0 : index
    %c0_28 = arith.constant 0 : index
    %46 = vector.load %arg10[%c0_27, %c0_28] : memref<1x128xf32, #tpu.memory_space<vmem>>, vector<1x128xf32>
    %47 = vector.broadcast %46 : vector<1x128xf32> to vector<128x128xf32>
    %48 = arith.addf %45, %47 : vector<128x128xf32>
    %49 = arith.addf %48, %7 : vector<128x128xf32>
    %50 = arith.truncf %49 : vector<128x128xf32> to vector<128x128xbf16>
    %c0_29 = arith.constant 0 : index
    %c0_30 = arith.constant 0 : index
    %51 = vector.load %arg11[%c0_29, %c0_30] : memref<128x128xbf16, #tpu.memory_space<vmem>>, vector<128x128xbf16>
    %cst_31 = arith.constant dense<0.000000e+00> : vector<128x128xf32>
    %52 = tpu.matmul %50, %51, %cst_31 {dimension_numbers = #tpu.dot_dimension_numbers<[1], [0], [0], [1], [0, 0, 1, 1], [], []>} : vector<128x128xbf16>, vector<128x128xbf16>, vector<128x128xf32> -> vector<128x128xf32>
    %c0_32 = arith.constant 0 : index
    %c0_33 = arith.constant 0 : index
    %53 = vector.load %arg12[%c0_32, %c0_33] : memref<1x128xf32, #tpu.memory_space<vmem>>, vector<1x128xf32>
    %54 = vector.broadcast %53 : vector<1x128xf32> to vector<128x128xf32>
    %55 = arith.addf %52, %54 : vector<128x128xf32>
    %cst_34 = arith.constant 0.000000e+00 : f32
    %56 = vector.broadcast %cst_34 : f32 to vector<128x128xf32>
    %57 = arith.cmpf ogt, %55, %56 : vector<128x128xf32>
    %58 = vector.broadcast %1 : f32 to vector<128x128xf32>
    %59 = arith.mulf %58, %55 : vector<128x128xf32>
    %60 = arith.select %57, %55, %59 : vector<128x128xi1>, vector<128x128xf32>
    %c0_35 = arith.constant 0 : index
    %c0_36 = arith.constant 0 : index
    %61 = vector.load %arg14[%c0_35, %c0_36] : memref<128x128xf32, #tpu.memory_space<vmem>>, vector<128x128xf32>
    tpu.vector_store %arg14[%c0_35, %c0_36], %60 {strides = array<i32>} : memref<128x128xf32, #tpu.memory_space<vmem>>, vector<128x128xf32>,
    return
  }
  func.func @transform_0(%arg0: i32) -> (i32, i32) {
    %c0_i32 = arith.constant 0 : i32
    %c0_i32_0 = arith.constant 0 : i32
    return %arg0, %c0_i32 : i32, i32
  }
  func.func @transform_1(%arg0: i32) -> (i32, i32) {
    %c0_i32 = arith.constant 0 : i32
    %c0_i32_0 = arith.constant 0 : i32
    %c0_i32_1 = arith.constant 0 : i32
    return %c0_i32, %c0_i32_0 : i32, i32
  }
  func.func @transform_2(%arg0: i32) -> (i32, i32) {
    %c0_i32 = arith.constant 0 : i32
    %c0_i32_0 = arith.constant 0 : i32
    %c0_i32_1 = arith.constant 0 : i32
    return %c0_i32, %c0_i32_0 : i32, i32
  }
  func.func @transform_3(%arg0: i32) -> (i32, i32) {
    %c0_i32 = arith.constant 0 : i32
    %c0_i32_0 = arith.constant 0 : i32
    %c0_i32_1 = arith.constant 0 : i32
    return %c0_i32, %c0_i32_0 : i32, i32
  }
  func.func @transform_4(%arg0: i32) -> (i32, i32) {
    %c0_i32 = arith.constant 0 : i32
    %c0_i32_0 = arith.constant 0 : i32
    %c0_i32_1 = arith.constant 0 : i32
    return %c0_i32, %c0_i32_0 : i32, i32
  }
  func.func @transform_5(%arg0: i32) -> (i32, i32) {
    %c0_i32 = arith.constant 0 : i32
    %c0_i32_0 = arith.constant 0 : i32
    %c0_i32_1 = arith.constant 0 : i32
    return %c0_i32, %c0_i32_0 : i32, i32
  }
  func.func @transform_6(%arg0: i32) -> (i32, i32) {
    %c0_i32 = arith.constant 0 : i32
    %c0_i32_0 = arith.constant 0 : i32
    %c0_i32_1 = arith.constant 0 : i32
    return %c0_i32, %c0_i32_0 : i32, i32
  }
  func.func @transform_7(%arg0: i32) -> (i32, i32) {
    %c0_i32 = arith.constant 0 : i32
    %c0_i32_0 = arith.constant 0 : i32
    %c0_i32_1 = arith.constant 0 : i32
    return %c0_i32, %c0_i32_0 : i32, i32
  }
  func.func @transform_8(%arg0: i32) -> (i32, i32) {
    %c0_i32 = arith.constant 0 : i32
    %c0_i32_0 = arith.constant 0 : i32
    %c0_i32_1 = arith.constant 0 : i32
    return %c0_i32, %c0_i32_0 : i32, i32
  }
  func.func @transform_9(%arg0: i32) -> (i32, i32) {
    %c0_i32 = arith.constant 0 : i32
    %c0_i32_0 = arith.constant 0 : i32
    %c0_i32_1 = arith.constant 0 : i32
    return %c0_i32, %c0_i32_0 : i32, i32
  }
  func.func @transform_10(%arg0: i32) -> (i32, i32) {
    %c0_i32 = arith.constant 0 : i32
    %c0_i32_0 = arith.constant 0 : i32
    %c0_i32_1 = arith.constant 0 : i32
    return %c0_i32, %c0_i32_0 : i32, i32
  }
  func.func @transform_11(%arg0: i32) -> (i32, i32) {
    %c0_i32 = arith.constant 0 : i32
    %c0_i32_0 = arith.constant 0 : i32
    %c0_i32_1 = arith.constant 0 : i32
    return %c0_i32, %c0_i32_0 : i32, i32
  }
  func.func @transform_12(%arg0: i32) -> (i32, i32) {
    %c0_i32 = arith.constant 0 : i32
    %c0_i32_0 = arith.constant 0 : i32
    %c0_i32_1 = arith.constant 0 : i32
    return %c0_i32, %c0_i32_0 : i32, i32
  }
  func.func @transform_13(%arg0: i32) -> (i32, i32) {
    %c0_i32 = arith.constant 0 : i32
    %c0_i32_0 = arith.constant 0 : i32
    return %arg0, %c0_i32 : i32, i32
  }
}

</mosaic_0001>

<bundles_post_ra>
// kernel: tpu_custom_call.1
= control target key start
LH: loop header
LB: loop body
LE: loop exit
PB: predicated region body
PF: predicated region fallthrough
CT: control target
= control target key end

     0   :  { %s2946_s0 = inlined_call_operand.hbm [shape: bf16[256,128], index: 0, kind: input, shape index: {}]   ;;  %s2947_s1 = inlined_call_operand.hbm [shape: bf16[128,128], index: 1, kind: input, shape index: {}]   ;;  %s2948_s2 = inlined_call_operand.vmem [shape: f32[1,128], index: 2, kind: input, shape index: {}]   ;;  %s2949_s3 = inlined_call_operand.hbm [shape: bf16[128,128], index: 3, kind: input, shape index: {}]   ;;  %s2950_s4 = inlined_call_operand.vmem [shape: f32[1,128], index: 4, kind: input, shape index: {}]   ;;  %s2951_s5 = inlined_call_operand.vmem [shape: f32[1,128], index: 5, kind: input, shape index: {}]   ;;  %s2952_s6 = inlined_call_operand.vmem [shape: f32[1,128], index: 6, kind: input, shape index: {}]   ;;  %s2953_s7 = inlined_call_operand.<no memory space> [shape: f32[1,1], index: 7, kind: input, shape index: {}]   ;;  %s2954_s8 = inlined_call_operand.hbm [shape: bf16[128,128], index: 8, kind: input, shape index: {}]   ;;  %s2955_s9 = inlined_call_operand.vmem [shape: f32[1,128], index: 9, kind: input, shape index: {}]   ;;  %s2956_s10 = inlined_call_operand.hbm [shape: bf16[128,128], index: 10, kind: input, shape index: {}]   ;;  %s2957_s11 = inlined_call_operand.vmem [shape: f32[1,128], index: 11, kind: input, shape index: {}]   ;;  %s2958_s12 = inlined_call_operand.<no memory space> [shape: f32[1,1], index: 12, kind: input, shape index: {}]   ;;  %s2959_s13 = inlined_call_operand.hbm [shape: f32[256,128], index: 13, kind: output, shape index: {}]  }
   0x1   :  { %2963 = sst [smem:[#allocation19_spill]] %s2947_s1 }
   0x2   :  { %2964 = sst [smem:[#allocation20_spill]] %s2949_s3 }
   0x3   :  { %2965 = sst [smem:[#allocation21_spill]] %s2954_s8 }
   0x4   :  { %2966 = sst [smem:[#allocation22_spill]] %s2956_s10 }
   0x5   :  { %18 = sst [smem:[#allocation2]] %s2953_s7 }
   0x6   :  { %19 = sst [smem:[#allocation3]] %s2958_s12 }
   0x7   :  { %20 = vsyncpa [#allocation5], 0 }
   0x8   :  { %22 = vsyncpa [#allocation5 + $0x1], 0 }
   0x9   :  { %23 = vsyncpa [#allocation8], 0 }
   0xa   :  { %24 = vsyncpa [#allocation11], 0 }
   0xb   :  { %25 = vsyncpa [#allocation6], 0 }
   0xc   :  { %27 = vsyncpa [#allocation6 + $0x1], 0  ;;  %s2380_s29 = smov 0   ;;  %s2382_s30 = smov 0  }
   0xd   :  { %s2384_s14 = smov 0   ;;  %s2386_s15 = smov 0  }
   0xe LB: > { %s2401_s7 = sadd.s32 4294967295, %s2293_s15   ;;  %s1713_s12 = sadd.s32 4294967294, %s2293_s15   ;;  %s2293_s15 = sphi %s2386_s15, %s2985_s15   ;;  %s2289_s14 = sphi %s2384_s14, %s2984_s14   ;;  %s2285_s30 = sphi %s2382_s30, %s2983_s30   ;;  %s2281_s29 = sphi %s2380_s29, %s2982_s29  }
   0xf   : > { %p53_p0 = scmp.ne.s32.totalorder %s2285_s30, %s2281_s29  ;;  %p54_p1 = scmp.eq.s32.totalorder %s2401_s7, 0 }
  0x10   : > { %p329_p2 = scmp.eq.s32.totalorder %s2401_s7, 1  ;;  %p335_p3 = scmp.eq.s32.totalorder %s1713_s12, 1 }
  0x11   : > { %p2410_p4 = por %p54_p1, %p53_p0  ;;  %p1714_p5 = scmp.ge.s32.totalorder %s2293_s15, 1 }
  0x12   : > { %p2415_p6 = por %p335_p3, %p53_p0  ;;  %p342_p7 = scmp.lt.s32.totalorder %s2293_s15, 3 }
  0x13   : > { %s2970_s1 = sld [smem:[#allocation19_spill]]  ;;  %s2295_s22 = smov [#allocation7]  }
  0x14   : > { %s2968_s17 = scalar_select %p2415_p6, 1, 0 }
  0x15   : > { %p2423_p8 = pnand %p1714_p5, %p342_p7  ;;  %s355_s23 = sshll.u32 %s2295_s22, 4  ;;  %s356_s23 = int_to_ptr.vmem [resolvable:$true] %s355_s23 }
  0x16   : > { %2969 = sst [smem:[#allocation18_spill]] %s2968_s17  ;;  %s2961_s28 = smov 64  }
  0x17   : > { %p1957_p9 = pneg %p2423_p8  ;;  %s2973_s8 = sld [smem:[#allocation21_spill]] }
  0x18   : > { %s2962_s12 = smov 4   ;;  %s2298_s18 = smov [#allocation10]  }
  0x19   : > { %s353_s20 = sshll.u32 %s2970_s1, 4  ;;  %p2431_p10 = pnand %p1957_p9, %p54_p1  ;;  %s354_s20 = int_to_ptr.hbm [resolvable:$true] %s353_s20 }
  0x1a   : > { %s398_s19 = sshll.u32 %s2298_s18, 4  ;;  %s2974_s3 = sld [smem:[#allocation20_spill]]  ;;  %s399_s19 = int_to_ptr.vmem [resolvable:$true] %s398_s19 }
  0x1b   : > { %1960 = dma.hbm_to_vmem [thread:$0]  (!%p2431_p10), %s354_s20, 1024, %s356_s23, [#allocation8], %s2961_s28, %s2961_s28, %s2962_s12  }
  0x1c   : > { %s2975_s10 = sld [smem:[#allocation22_spill]]  ;;  %s2299_s26 = smov [#allocation9]  }
  0x1d   : > { %s396_s27 = sshll.u32 %s2973_s8, 4  ;;  %s372_s1 = sshll.u32 %s2299_s26, 4  ;;  %s397_s27 = int_to_ptr.hbm [resolvable:$true] %s396_s27  ;;  %s373_s1 = int_to_ptr.vmem [resolvable:$true] %s372_s1 }
  0x1e   : > { %1966 = dma.hbm_to_vmem [thread:$0]  (!%p2431_p10), %s397_s27, 1024, %s399_s19, [#allocation11], %s2961_s28, %s2961_s28, %s2962_s12  }
  0x1f   : > { %s2300_s18 = smov [#allocation12]   ;;  %s2466_s19 = sadd.s32 1, %s2293_s15  }
  0x20   : > { %s370_s17 = sshll.u32 %s2974_s3, 4  ;;  %s415_s27 = sshll.u32 %s2300_s18, 4  ;;  %s371_s17 = int_to_ptr.hbm [resolvable:$true] %s370_s17  ;;  %s416_s27 = int_to_ptr.vmem [resolvable:$true] %s415_s27 }
  0x21   : > { %1963 = dma.hbm_to_vmem [thread:$0]  (!%p2431_p10), %s371_s17, 1024, %s373_s1, [#allocation8], %s2961_s28, %s2961_s28, %s2962_s12  }
  0x22   : > { %s413_s25 = sshll.u32 %s2975_s10, 4  ;;  %s40_s22 = sadd.s32 1, %s2289_s14  ;;  %s414_s25 = int_to_ptr.hbm [resolvable:$true] %s413_s25 }
  0x23   : > { %1969 = dma.hbm_to_vmem [thread:$0]  (!%p2431_p10), %s414_s25, 1024, %s416_s27, [#allocation11], %s2961_s28, %s2961_s28, %s2962_s12  }
  0x24   : > { %s37_s20 = ssub.s32 %s2293_s15, %s2466_s19  ;;  %p47_p12 = scmp.ne.s32.totalorder %s2289_s14, %s2285_s30 }
  0x25   : > { %p38_p13 = scmp.eq.s32.totalorder %s37_s20, 0  ;;  %p48_p0 = scmp.eq.s32.totalorder %s2293_s15, 0 }
  0x26   : > { %p2476_p3 = por %p329_p2, %p47_p12  ;;  %p1982_p5 = scmp.lt.s32.totalorder %s2293_s15, 2 }
  0x27   : > { %s2482_s23 = scalar_select %p38_p13, %s2289_s14, %s40_s22  }
  0x28   : > { %p49_p7 = por %p48_p0, %p47_p12  ;;  %s435_s24 = sand.u32 1, %s2289_s14  }
  0x29   : > { %s1720_s26 = sshll.u32 %s435_s24, 6  ;;  %s1895_s25 = sshll.u32 %s2293_s15, 6 }
  0x2a   : > { %s444_s27 = scalar_lea.hbm %s2946_s0, %s1895_s25  ;;  %s439_s28 = scalar_lea.vmem [#allocation4], %s1720_s26 }
  0x2b   : > { %s447_s12 = sshll.u32 %s439_s28, 4  ;;  %s445_s20 = sshll.u32 %s444_s27, 4  ;;  %s448_s12 = int_to_ptr.vmem [resolvable:$true] %s447_s12  ;;  %s446_s20 = int_to_ptr.hbm [resolvable:$true] %s445_s20 }
  0x2c   : > { %p2489_p2 = pnand %p1982_p5, %p49_p7  ;;  %s436_s22 = scalar_lea.sflag [#allocation5], %s435_s24 }
  0x2d   : > { %s2189_s8 = sshra.s32 %s446_s20, 4  ;;  %s2196_s28 = scalar_lea.hbm %s2946_s0, 128  ;;  %s2190_s8 = int_to_ptr.hbm [resolvable:$true] %s2189_s8 }
  0x2e   : > { %s2191_s10 = scalar_lea.hbm %s2190_s8, 64  ;;  %p2193_p10 = pneg %p2489_p2 }
  0x2f   : > { %p2192_p9 = scmp.ne.s32.totalorder %s2190_s8, %s2191_s10  ;;  %p2197_p0 = scmp.lt.s32.totalorder %s2190_s8, %s2946_s0 }
  0x30   : > { %p2198_p5 = scmp.lt.s32.totalorder %s2196_s28, %s2191_s10 }
  0x31   : > { %p2194_p12 = pnand %p2193_p10, %p2192_p9 }
  0x32   : > { %p2199_p7 = por %p2198_p5, %p2197_p0 }
  0x33   : > { %p2195_p13 = pneg %p2194_p12 }
  0x35   : > { %p2200_p11 = pnand %p2199_p7, %p2195_p13 }
  0x37   : > { %2203 = shalt.err (!%p2200_p11)
}
  0x38   : > { %s2978_s24 = smov 4   ;;  %s2979_s27 = smov 64  }
  0x39   : > { %1973 = dma.hbm_to_vmem [thread:$0]  (!%p2489_p2), %s446_s20, 1024, %s448_s12, %s436_s22, %s2979_s27, %s2979_s27, %s2978_s24  }
  0x3a   : > { %459 = sbr.rel (%p2423_p8) target bundleno = 1200 (0x4b0), region = 72  ;;  %s2509_s25 = sand.u32 (!%p2423_p8), 1, %s2285_s30  }
  0x3b   : > { %s1724_s8 = sshll.u32 (!%p2423_p8), %s2509_s25, 6  ;;  %s462_s10 = scalar_lea.sflag (!%p2423_p8), [#allocation5], %s2509_s25 }
  0x3c   : > { %s2513_s26 = scalar_lea.vmem (!%p2423_p8), [#allocation4], %s1724_s8 }
  0x3f   : > { %2264 = dma.done.wait (%p2410_p4), %s462_s10, 1024  }
  0x40   : > { %2266 = vsyncadd (%p2410_p4), %s462_s10, 4294966272 }
  0x41   : > { %2268 = dma.done.wait (%p54_p1), [#allocation8], 2048  }
  0x42   : > { %2270 = vsyncadd (%p54_p1), [#allocation8], 4294965248 }
  0x43   : > { %2272 = dma.done.wait (%p54_p1), [#allocation11], 2048  }
  0x44   : > { %2274 = vsyncadd (%p54_p1), [#allocation11], 4294965248  ;;  %v1911_v0 = vld [vmem:[#allocation7 + $0x38] sm:$0xff]  ;;  %v1910_v1 = vld [vmem:[#allocation7 + $0x30] sm:$0xff]  ;;  %s531_s28 = sld [smem:[#allocation2]]  ;;  %s1729_s3 = sshll.u32 %s2509_s25, 7 }
  0x45   : > { %665 = vmatpush.bf16.msra.mxu0 %v1911_v0  ;;  %v1909_v2 = vld [vmem:[#allocation7 + $0x28] sm:$0xff]  ;;  %v1908_v3 = vld [vmem:[#allocation7 + $0x20] sm:$0xff]  ;;  %v1907_v4 = vld [vmem:[#allocation7 + $0x18] sm:$0xff]  ;;  %s532_s8 = sld [smem:[#allocation3]]  ;;  %s2852_s16 = scalar_lea.vmem [#allocation13], %s1729_s3 }
  0x46   : > { %v1906_v5 = vld [vmem:[#allocation7 + $0x10] sm:$0xff]  ;;  %v1905_v6 = vld [vmem:[#allocation7 + $0x8] sm:$0xff]  ;;  %v1904_v7 = vld [vmem:[#allocation7] sm:$0xff]  ;;  %s1936_s21 = sshll.u32 %s2401_s7, 7  ;;  %s1587_s7 = scalar_lea.sflag [#allocation6], %s2509_s25 }
  0x47   : > { %v1896_v8 = vld [vmem:[%s2513_s26] sm:$0xff]  ;;  %v1897_v9 = vld [vmem:[%s2513_s26 + $0x8] sm:$0xff]  ;;  %v1919_v10 = vld [vmem:[#allocation9 + $0x38] sm:$0xff]  ;;  %s1598_s22 = scalar_lea.hbm %s2959_s13, %s1936_s21  ;;  %s2239_s10 = scalar_lea.hbm %s2959_s13, 256 }
  0x48   : > { %790 = vmatpush.bf16.msra.mxu1 %v1919_v10  ;;  %v1918_v11 = vld [vmem:[#allocation9 + $0x30] sm:$0xff]  ;;  %v1917_v12 = vld [vmem:[#allocation9 + $0x28] sm:$0xff]  ;;  %v1916_v13 = vld [vmem:[#allocation9 + $0x20] sm:$0xff]  ;;  %s1601_s1 = sshll.u32 %s1598_s22, 4  ;;  %s1602_s1 = int_to_ptr.hbm [resolvable:$true] %s1601_s1 }
  0x49   : > { %666 = vmatpush.bf16.msra.mxu0 %v1910_v1  ;;  %v1898_v14 = vld [vmem:[%s2513_s26 + $0x10] sm:$0xff]  ;;  %v1915_v15 = vld [vmem:[#allocation9 + $0x18] sm:$0xff]  ;;  %v1900_v17 = vld [vmem:[%s2513_s26 + $0x20] sm:$0xff]  ;;  %s2233_s18 = sshra.s32 %s1602_s1, 4  ;;  %s2234_s18 = int_to_ptr.hbm [resolvable:$true] %s2233_s18 }
  0x4a   : > { %v1899_v16 = vld [vmem:[%s2513_s26 + $0x18] sm:$0xff]  ;;  %v1914_v18 = vld [vmem:[#allocation9 + $0x10] sm:$0xff]  ;;  %v1913_v19 = vld [vmem:[#allocation9 + $0x8] sm:$0xff]  ;;  %s2235_s24 = scalar_lea.hbm %s2234_s18, 128  ;;  %p2240_p11 = scmp.lt.s32.totalorder %s2234_s18, %s2959_s13 }
  0x4b   : > { %v1912_v20 = vld [vmem:[#allocation9] sm:$0xff]  ;;  %v1901_v21 = vld [vmem:[%s2513_s26 + $0x28] sm:$0xff]  ;;  %v1902_v27 = vld [vmem:[%s2513_s26 + $0x30] sm:$0xff]  ;;  %p2236_p1 = scmp.ne.s32.totalorder %s2234_s18, %s2235_s24  ;;  %p2241_p2 = scmp.lt.s32.totalorder %s2239_s10, %s2235_s24 }
  0x4c   : > { %791 = vmatpush.bf16.msra.mxu1 %v1918_v11  ;;  %v2029_v23 = vld [vmem:[%s2948_s2] ss:$0 sm:$0xff]  ;;  %v1903_v33 = vld [vmem:[%s2513_s26 + $0x38] sm:$0xff] }
  0x4d   : > { %667 = vmatpush.bf16.msra.mxu0 %v1909_v2  ;;  %v2577_v55 = vld [vmem:[%s2950_s4] ss:$0 sm:$0xff]  ;;  %p2237_p4 = pnand %p2236_p1, %p2476_p3  ;;  %p2242_p9 = por %p2241_p2, %p2240_p11 }
  0x4f   : > { %p2238_p8 = pneg %p2237_p4 }
  0x50   : > { %792 = vmatpush.bf16.msra.mxu1 %v1917_v12 }
  0x51   : > { %668 = vmatpush.bf16.msra.mxu0 %v1908_v3  ;;  %p2243_p10 = pnand %p2242_p9, %p2238_p8 }
  0x54   : > { %793 = vmatpush.bf16.msra.mxu1 %v1916_v13 }
  0x55   : > { %669 = vmatpush.bf16.msra.mxu0 %v1907_v4 }
  0x58   : > { %794 = vmatpush.bf16.msra.mxu1 %v1915_v15 }
  0x59   : > { %670 = vmatpush.bf16.msra.mxu0 %v1906_v5 }
  0x5c   : > { %795 = vmatpush.bf16.msra.mxu1 %v1914_v18 }
  0x5d   : > { %671 = vmatpush.bf16.msra.mxu0 %v1905_v6 }
  0x60   : > { %796 = vmatpush.bf16.msra.mxu1 %v1913_v19 }
  0x61   : > { %672 = vmatpush.bf16.msra.mxu0 %v1904_v7 }
  0x64   : > { %673 = vmatmul.bf16.vlgmr.msra.gmra.mxu0 %v1896_v8  ;;  %797 = vmatpush.bf16.msra.mxu1 %v1912_v20 }
  0x74   : > { %678 = vmatmul.bf16.gmra.mxu0 %v1897_v9 }
  0x84   : > { %683 = vmatmul.bf16.gmra.mxu0 %v1898_v14 }
  0x94   : > { %688 = vmatmul.bf16.gmra.mxu0 %v1899_v16  ;;  %v2301_v16 = vmov 128.0  }
  0x95   : > { %2035 = vrcp.f32 %v2301_v16 }
  0xa4   : > { %693 = vmatmul.bf16.gmra.mxu0 %v1900_v17  ;;  %v2036_v17 = vpop.eup %2035 }
  0xa5   : > { %v872_v18 = vmul.f32 128.0, %v2036_v17  ;;  %vm876_vm0 = vweird.f32 %v2036_v17 }
  0xa7   : > { %v873_v19 = vsub.f32 1.0, %v872_v18 }
  0xa9   : > { %v874_v20 = vmul.f32 %v2036_v17, %v873_v19 }
  0xb4   : > { %698 = vmatmul.bf16.gmra.mxu0 %v1901_v21  ;;  %v875_v21 = vadd.f32 %v2036_v17, %v874_v20 }
  0xc4   : > { %703 = vmatmul.bf16.gmra.mxu0 %v1902_v27 }
  0xd4   : > { %708 = vmatmul.bf16.gmra.mxu0 %v1903_v33 }
  0xe1   : > { %v674_v22 = vpop.f32.mrf.mxu0 }
  0xe2   : > { %v2536_v25 = vadd.f32 %v2029_v23, %v674_v22 }
  0xe9   : > { %v676_v24 = vpop.f32.mrf.mxu0 }
  0xea   : > { %v2538_v26 = vadd.f32 %v2029_v23, %v676_v24 }
  0xec   : > { %v714_v28 = vpack.c.bf16 %v2538_v26, %v2536_v25 }
  0xee   : > { %798 = vmatmul.bf16.vlgmr.msra.gmra.mxu1 %v714_v28 }
  0xf1   : > { %v679_v29 = vpop.f32.mrf.mxu0 }
  0xf2   : > { %v2543_v30 = vadd.f32 %v2029_v23, %v679_v29 }
  0xf9   : > { %v681_v31 = vpop.f32.mrf.mxu0 }
  0xfa   : > { %v2545_v32 = vadd.f32 %v2029_v23, %v681_v31 }
  0xfc   : > { %v715_v34 = vpack.c.bf16 %v2545_v32, %v2543_v30 }
  0xfe   : > { %803 = vmatmul.bf16.gmra.mxu1 %v715_v34 }
 0x101   : > { %v684_v35 = vpop.f32.mrf.mxu0 }
 0x102   : > { %v2550_v36 = vadd.f32 %v2029_v23, %v684_v35 }
 0x109   : > { %v686_v37 = vpop.f32.mrf.mxu0 }
 0x10a   : > { %v2552_v38 = vadd.f32 %v2029_v23, %v686_v37 }
 0x10c   : > { %v716_v39 = vpack.c.bf16 %v2552_v38, %v2550_v36 }
 0x10e   : > { %808 = vmatmul.bf16.gmra.mxu1 %v716_v39 }
 0x111   : > { %v689_v40 = vpop.f32.mrf.mxu0 }
 0x112   : > { %v2556_v41 = vadd.f32 %v2029_v23, %v689_v40 }
 0x119   : > { %v691_v42 = vpop.f32.mrf.mxu0 }
 0x11a   : > { %v2558_v43 = vadd.f32 %v2029_v23, %v691_v42 }
 0x11c   : > { %v717_v44 = vpack.c.bf16 %v2558_v43, %v2556_v41 }
 0x11e   : > { %813 = vmatmul.bf16.gmra.mxu1 %v717_v44 }
 0x121   : > { %v694_v45 = vpop.f32.mrf.mxu0 }
 0x122   : > { %v2562_v46 = vadd.f32 %v2029_v23, %v694_v45 }
 0x129   : > { %v696_v47 = vpop.f32.mrf.mxu0 }
 0x12a   : > { %v2564_v48 = vadd.f32 %v2029_v23, %v696_v47 }
 0x12c   : > { %v718_v49 = vpack.c.bf16 %v2564_v48, %v2562_v46 }
 0x12e   : > { %818 = vmatmul.bf16.gmra.mxu1 %v718_v49 }
 0x131   : > { %v699_v50 = vpop.f32.mrf.mxu0 }
 0x132   : > { %v2568_v52 = vadd.f32 %v2029_v23, %v699_v50 }
 0x139   : > { %v701_v51 = vpop.f32.mrf.mxu0 }
 0x13a   : > { %v2570_v53 = vadd.f32 %v2029_v23, %v701_v51 }
 0x13c   : > { %v719_v54 = vpack.c.bf16 %v2570_v53, %v2568_v52 }
 0x13e   : > { %823 = vmatmul.bf16.gmra.mxu1 %v719_v54 }
 0x141   : > { %v704_v56 = vpop.f32.mrf.mxu0 }
 0x142   : > { %v2580_v60 = vadd.f32 %v2029_v23, %v704_v56 }
 0x149   : > { %v706_v59 = vpop.f32.mrf.mxu0 }
 0x14a   : > { %v2582_v61 = vadd.f32 %v2029_v23, %v706_v59 }
 0x14c   : > { %v720_v0 = vpack.c.bf16 %v2582_v61, %v2580_v60 }
 0x14e   : > { %828 = vmatmul.bf16.gmra.mxu1 %v720_v0 }
 0x151   : > { %v709_v1 = vpop.f32.mrf.mxu0 }
 0x152   : > { %v2588_v4 = vadd.f32 %v2029_v23, %v709_v1 }
 0x159   : > { %v711_v5 = vpop.f32.mrf.mxu0 }
 0x15a   : > { %v2590_v6 = vadd.f32 %v2029_v23, %v711_v5  ;;  %v2598_v23 = vsel %vm876_vm0, %v2036_v17, %v875_v21  ;;  %v1926_v21 = vld [vmem:[#allocation10 + $0x30] sm:$0xff] }
 0x15c   : > { %v721_v9 = vpack.c.bf16 %v2590_v6, %v2588_v4 }
 0x15e   : > { %833 = vmatmul.bf16.gmra.mxu1 %v721_v9 }
 0x16b   : > { %v799_v57 = vpop.f32.mrf.mxu1 }
 0x16c   : > { %v800_v58 = vadd.f32 %v2577_v55, %v799_v57 }
 0x16e   : > { %839 = vadd.xlane.f32.xlu0 %v800_v58 }
 0x173   : > { %v801_v62 = vpop.f32.mrf.mxu1 }
 0x174   : > { %v802_v63 = vadd.f32 %v2577_v55, %v801_v62 }
 0x176   : > { %841 = vadd.xlane.f32.xlu0 %v802_v63 }
 0x17b   : > { %v804_v2 = vpop.f32.mrf.mxu1 }
 0x17c   : > { %v805_v3 = vadd.f32 %v2577_v55, %v804_v2 }
 0x17e   : > { %843 = vadd.xlane.f32.xlu1 %v805_v3 }
 0x183   : > { %v806_v7 = vpop.f32.mrf.mxu1 }
 0x184   : > { %v807_v8 = vadd.f32 %v2577_v55, %v806_v7 }
 0x186   : > { %845 = vadd.xlane.f32.xlu1 %v807_v8 }
 0x18b   : > { %v809_v10 = vpop.f32.mrf.mxu1 }
 0x18c   : > { %v810_v11 = vadd.f32 %v2577_v55, %v809_v10 }
 0x18e   : > { %847 = vadd.xlane.f32.xlu2 %v810_v11 }
 0x193   : > { %v811_v12 = vpop.f32.mrf.mxu1 }
 0x194   : > { %v812_v13 = vadd.f32 %v2577_v55, %v811_v12 }
 0x196   : > { %849 = vadd.xlane.f32.xlu2 %v812_v13 }
 0x19b   : > { %v814_v14 = vpop.f32.mrf.mxu1 }
 0x19c   : > { %v815_v15 = vadd.f32 %v2577_v55, %v814_v14 }
 0x19e   : > { %851 = vadd.xlane.f32.xlu2 %v815_v15 }
 0x1a3   : > { %v816_v22 = vpop.f32.mrf.mxu1 }
 0x1a4   : > { %v2609_v37 = vadd.f32 %v2577_v55, %v816_v22  ;;  %v1925_v22 = vld [vmem:[#allocation10 + $0x28] sm:$0xff] }
 0x1ab   : > { %v819_v31 = vpop.f32.mrf.mxu1 }
 0x1ac   : > { %v2618_v47 = vadd.f32 %v2577_v55, %v819_v31 }
 0x1b3   : > { %v821_v40 = vpop.f32.mrf.mxu1 }
 0x1b4   : > { %v2627_v57 = vadd.f32 %v2577_v55, %v821_v40  ;;  %v1920_v40 = vld [vmem:[#allocation10] sm:$0xff] }
 0x1bb   : > { %v824_v51 = vpop.f32.mrf.mxu1 }
 0x1bc   : > { %v2636_v1 = vadd.f32 %v2577_v55, %v824_v51 }
 0x1e1   : > { %v840_v24 = vpop.xlane.xlu0 %839 }
 0x1e2   : > { %v878_v27 = vmul.f32 %v2598_v23, %v840_v24  ;;  %v1924_v24 = vld [vmem:[#allocation10 + $0x20] sm:$0xff] }
 0x1e4   : > { %v2601_v28 = vsub.f32 %v800_v58, %v878_v27  ;;  %v1923_v27 = vld [vmem:[#allocation10 + $0x18] sm:$0xff] }
 0x1e6   : > { %v910_v29 = vmul.f32 %v2601_v28, %v2601_v28 }
 0x1e8   : > { %926 = vadd.xlane.f32.xlu0 %v910_v29  ;;  %v1922_v29 = vld [vmem:[#allocation10 + $0x10] sm:$0xff] }
 0x1e9   : > { %v842_v33 = vpop.xlane.xlu0 %841 }
 0x1ea   : > { %v879_v34 = vmul.f32 %v2598_v23, %v842_v33 }
 0x1ec   : > { %v2606_v35 = vsub.f32 %v802_v63, %v879_v34  ;;  %v826_v63 = vpop.f32.mrf.mxu1  ;;  %v1921_v34 = vld [vmem:[#allocation10 + $0x8] sm:$0xff] }
 0x1ee   : > { %v911_v39 = vmul.f32 %v2606_v35, %v2606_v35 }
 0x1f0   : > { %853 = vadd.xlane.f32.xlu0 %v2609_v37  ;;  %928 = vadd.xlane.f32.xlu1 %v911_v39 }
 0x1f1   : > { %v844_v42 = vpop.xlane.xlu1 %843 }
 0x1f2   : > { %v880_v44 = vmul.f32 %v2598_v23, %v844_v42 }
 0x1f4   : > { %v2615_v45 = vsub.f32 %v805_v3, %v880_v44  ;;  %v829_v9 = vpop.f32.mrf.mxu1 }
 0x1f5   : > { %v2654_v16 = vadd.f32 %v2577_v55, %v829_v9 }
 0x1f6   : > { %v912_v49 = vmul.f32 %v2615_v45, %v2615_v45 }
 0x1f8   : > { %855 = vadd.xlane.f32.xlu0 %v2618_v47  ;;  %930 = vadd.xlane.f32.xlu1 %v912_v49 }
 0x1f9   : > { %v846_v50 = vpop.xlane.xlu1 %845 }
 0x1fa   : > { %v881_v54 = vmul.f32 %v2598_v23, %v846_v50 }
 0x1fc   : > { %v2624_v56 = vsub.f32 %v807_v8, %v881_v54  ;;  %v2645_v8 = vadd.f32 %v2577_v55, %v826_v63  ;;  %v831_v17 = vpop.f32.mrf.mxu1 }
 0x1fd   : > { %v2660_v18 = vadd.f32 %v2577_v55, %v831_v17 }
 0x1fe   : > { %v913_v58 = vmul.f32 %v2624_v56, %v2624_v56 }
 0x200   : > { %932 = vadd.xlane.f32.xlu2 %v913_v58  ;;  %857 = vadd.xlane.f32.xlu1 %v2627_v57 }
 0x201   : > { %v848_v59 = vpop.xlane.xlu2 %847 }
 0x202   : > { %v882_v62 = vmul.f32 %v2598_v23, %v848_v59 }
 0x204   : > { %v2633_v0 = vsub.f32 %v810_v11, %v882_v62  ;;  %v834_v19 = vpop.f32.mrf.mxu1 }
 0x205   : > { %v2664_v20 = vadd.f32 %v2577_v55, %v834_v19 }
 0x206   : > { %v914_v2 = vmul.f32 %v2633_v0, %v2633_v0 }
 0x208   : > { %934 = vadd.xlane.f32.xlu2 %v914_v2  ;;  %859 = vadd.xlane.f32.xlu1 %v2636_v1 }
 0x209   : > { %v850_v3 = vpop.xlane.xlu2 %849 }
 0x20a   : > { %v883_v5 = vmul.f32 %v2598_v23, %v850_v3 }
 0x20c   : > { %v2642_v7 = vsub.f32 %v812_v13, %v883_v5 }
 0x20e   : > { %v915_v10 = vmul.f32 %v2642_v7, %v2642_v7 }
 0x210   : > { %861 = vadd.xlane.f32.xlu2 %v2645_v8  ;;  %936 = vadd.xlane.f32.xlu0 %v915_v10 }
 0x211   : > { %v852_v11 = vpop.xlane.xlu2 %851 }
 0x212   : > { %v884_v12 = vmul.f32 %v2598_v23, %v852_v11 }
 0x214   : > { %v2651_v14 = vsub.f32 %v815_v15, %v884_v12  ;;  %v1927_v15 = vld [vmem:[#allocation10 + $0x38] sm:$0xff] }
 0x215   : > { %1331 = vmatpush.bf16.msra.mxu2 %v1927_v15 }
 0x216   : > { %v916_v13 = vmul.f32 %v2651_v14, %v2651_v14 }
 0x218   : > { %863 = vadd.xlane.f32.xlu2 %v2654_v16  ;;  %938 = vadd.xlane.f32.xlu0 %v916_v13 }
 0x219   : > { %1332 = vmatpush.bf16.msra.mxu2 %v1926_v21 }
 0x21d   : > { %1333 = vmatpush.bf16.msra.mxu2 %v1925_v22 }
 0x220   : > { %865 = vadd.xlane.f32.xlu0 %v2660_v18 }
 0x221   : > { %1334 = vmatpush.bf16.msra.mxu2 %v1924_v24 }
 0x225   : > { %1335 = vmatpush.bf16.msra.mxu2 %v1923_v27 }
 0x228   : > { %867 = vadd.xlane.f32.xlu0 %v2664_v20 }
 0x229   : > { %1336 = vmatpush.bf16.msra.mxu2 %v1922_v29 }
 0x22d   : > { %1337 = vmatpush.bf16.msra.mxu2 %v1921_v34 }
 0x231   : > { %1338 = vmatpush.bf16.msra.mxu2 %v1920_v40  ;;  %v836_v40 = vpop.f32.mrf.mxu1 }
 0x25b   : > { %v927_v31 = vpop.xlane.xlu0 %926 }
 0x25c   : > { %v958_v33 = vmul.f32 %v927_v31, %v2598_v23 }
 0x25e   : > { %v974_v39 = vadd.f32 1e-05, %v958_v33 }
 0x260   : > { %2037 = vrsqrt.f32 %v974_v39  ;;  %vm996_vm2 = vweird.f32 %v974_v39 }
 0x263   : > { %v929_v42 = vpop.xlane.xlu1 %928  ;;  %v854_v44 = vpop.xlane.xlu0 %853 }
 0x264   : > { %v959_v49 = vmul.f32 %v929_v42, %v2598_v23  ;;  %v885_v50 = vmul.f32 %v2598_v23, %v854_v44 }
 0x266   : > { %v2038_v51 = vpop.eup %2037  ;;  %v975_v54 = vadd.f32 1e-05, %v959_v49  ;;  %v2671_v58 = vsub.f32 %v2609_v37, %v885_v50 }
 0x267   : > { %v991_v59 = vmul.f32 %v2038_v51, %v974_v39  ;;  %vm997_vm1 = vweird.f32 %v2038_v51 }
 0x268   : > { %2039 = vrsqrt.f32 %v975_v54  ;;  %v917_v62 = vmul.f32 %v2671_v58, %v2671_v58  ;;  %vm998_vm3 = vmor %vm996_vm2, %vm997_vm1  ;;  %vm1006_vm5 = vweird.f32 %v975_v54 }
 0x269   : > { %v992_v63 = vmul.f32 %v2038_v51, %v991_v59  ;;  %v2697_v59 = vld [vmem:[%s2952_s6] ss:$0 sm:$0xff] }
 0x26a   : > { %940 = vadd.xlane.f32.xlu1 %v917_v62  ;;  %v2700_v62 = vadd.f32 %v2577_v55, %v836_v40 }
 0x26b   : > { %v993_v2 = vmul.f32 0.5, %v992_v63  ;;  %v931_v3 = vpop.xlane.xlu1 %930  ;;  %v856_v5 = vpop.xlane.xlu0 %855 }
 0x26c   : > { %v960_v9 = vmul.f32 %v931_v3, %v2598_v23  ;;  %v886_v10 = vmul.f32 %v2598_v23, %v856_v5 }
 0x26d   : > { %v994_v11 = vsub.f32 1.5, %v993_v2 }
 0x26e   : > { %v2040_v12 = vpop.eup %2039  ;;  %v976_v13 = vadd.f32 1e-05, %v960_v9  ;;  %v2678_v37 = vsub.f32 %v2618_v47, %v886_v10  ;;  %v2686_v47 = vld [vmem:[%s2951_s5] ss:$0 sm:$0xff] }
 0x26f   : > { %v995_v17 = vmul.f32 %v2038_v51, %v994_v11  ;;  %v1001_v19 = vmul.f32 %v2040_v12, %v975_v54  ;;  %vm1007_vm4 = vweird.f32 %v2040_v12 }
 0x270   : > { %2041 = vrsqrt.f32 %v976_v13  ;;  %v918_v15 = vmul.f32 %v2678_v37, %v2678_v37  ;;  %vm1008_vm6 = vmor %vm1006_vm5, %vm1007_vm4  ;;  %vm1016_vm8 = vweird.f32 %v976_v13 }
 0x271   : > { %v999_v21 = vsel %vm998_vm3, %v2038_v51, %v995_v17  ;;  %v1002_v22 = vmul.f32 %v2040_v12, %v1001_v19  ;;  %v2710_v19 = vstv %s531_s28  ;;  %s1599_s28 = sshll.u32 %s2852_s16, 4  ;;  %s1600_s28 = int_to_ptr.vmem [resolvable:$true] %s1599_s28 }
 0x272   : > { %942 = vadd.xlane.f32.xlu1 %v918_v15  ;;  %v1150_v24 = vmul.f32 %v999_v21, %v2601_v28 }
 0x273   : > { %v1003_v27 = vmul.f32 0.5, %v1002_v22  ;;  %v933_v29 = vpop.xlane.xlu2 %932  ;;  %v858_v31 = vpop.xlane.xlu1 %857 }
 0x274   : > { %v961_v33 = vmul.f32 %v933_v29, %v2598_v23  ;;  %v887_v34 = vmul.f32 %v2598_v23, %v858_v31  ;;  %v1170_v51 = vmul.f32 %v2686_v47, %v1150_v24 }
 0x275   : > { %v1004_v39 = vsub.f32 1.5, %v1003_v27 }
 0x276   : > { %v2042_v42 = vpop.eup %2041  ;;  %v977_v44 = vadd.f32 1e-05, %v961_v33  ;;  %v2691_v28 = vsub.f32 %v2627_v57, %v887_v34  ;;  %v1190_v10 = vadd.f32 %v2697_v59, %v1170_v51 }
 0x277   : > { %v1005_v49 = vmul.f32 %v2040_v12, %v1004_v39  ;;  %v1011_v50 = vmul.f32 %v2042_v42, %v976_v13  ;;  %vm1017_vm7 = vweird.f32 %v2042_v42 }
 0x278   : > { %2043 = vrsqrt.f32 %v977_v44  ;;  %v919_v63 = vmul.f32 %v2691_v28, %v2691_v28  ;;  %v1223_v29 = vmul.f32 %v2710_v19, %v1190_v10  ;;  %vm1018_vm9 = vmor %vm1016_vm8, %vm1017_vm7  ;;  %vm1206_vm10 = vcmp.gt.f32.partialorder %v1190_v10, 0.0 }
 0x279   : > { %v1009_v57 = vsel %vm1008_vm6, %v2040_v12, %v1005_v49  ;;  %v1012_v2 = vmul.f32 %v2042_v42, %v1011_v50  ;;  %vm1026_vm13 = vweird.f32 %v977_v44 }
 0x27a   : > { %v1151_v54 = vmul.f32 %v1009_v57, %v2606_v35  ;;  %944 = vadd.xlane.f32.xlu2 %v919_v63  ;;  %869 = vadd.xlane.f32.xlu1 %v2700_v62  ;;  %v1239_v50 = vsel %vm1206_vm10, %v1190_v10, %v1223_v29 }
 0x27b   : > { %v1013_v3 = vmul.f32 0.5, %v1012_v2  ;;  %v935_v5 = vpop.xlane.xlu2 %934  ;;  %v860_v9 = vpop.xlane.xlu1 %859 }
 0x27c   : > { %v962_v11 = vmul.f32 %v935_v5, %v2598_v23  ;;  %v888_v55 = vmul.f32 %v2598_v23, %v860_v9  ;;  %v1171_v17 = vmul.f32 %v2686_v47, %v1151_v54 }
 0x27d   : > { %v1014_v12 = vsub.f32 1.5, %v1013_v3 }
 0x27e   : > { %v2044_v15 = vpop.eup %2043  ;;  %v978_v35 = vadd.f32 1e-05, %v962_v11  ;;  %v2713_v21 = vsub.f32 %v2636_v1, %v888_v55  ;;  %v1191_v22 = vadd.f32 %v2697_v59, %v1171_v17 }
 0x27f   : > { %v1015_v24 = vmul.f32 %v2042_v42, %v1014_v12  ;;  %v1021_v27 = vmul.f32 %v2044_v15, %v977_v44  ;;  %vm1027_vm12 = vweird.f32 %v2044_v15 }
 0x280   : > { %2045 = vrsqrt.f32 %v978_v35  ;;  %v920_v31 = vmul.f32 %v2713_v21, %v2713_v21  ;;  %vm1207_vm11 = vcmp.gt.f32.partialorder %v1191_v22, 0.0  ;;  %v1224_v39 = vmul.f32 %v2710_v19, %v1191_v22  ;;  %vm1028_vm14 = vmor %vm1026_vm13, %vm1027_vm12 }
 0x281   : > { %v1019_v33 = vsel %vm1018_vm9, %v2042_v42, %v1015_v24  ;;  %v1022_v34 = vmul.f32 %v2044_v15, %v1021_v27  ;;  %vm1036_vm0 = vweird.f32 %v978_v35 }
 0x282   : > { %946 = vadd.xlane.f32.xlu2 %v920_v31  ;;  %v1152_v1 = vmul.f32 %v1019_v33, %v2615_v45  ;;  %v1240_v51 = vsel %vm1207_vm11, %v1191_v22, %v1224_v39 }
 0x283   : > { %v1023_v40 = vmul.f32 0.5, %v1022_v34  ;;  %v862_v49 = vpop.xlane.xlu2 %861  ;;  %v937_v13 = vpop.xlane.xlu0 %936  ;;  %v1255_v2 = vpack.c.bf16 %v1240_v51, %v1239_v50 }
 0x284   : > { %v889_v63 = vmul.f32 %v2598_v23, %v862_v49  ;;  %v963_v57 = vmul.f32 %v937_v13, %v2598_v23  ;;  %v1172_v11 = vmul.f32 %v2686_v47, %v1152_v1 }
 0x285   : > { %v1024_v54 = vsub.f32 1.5, %v1023_v40  ;;  %1339 = vmatmul.bf16.vlgmr.msra.gmra.mxu2 %v1255_v2 }
 0x286   : > { %v2046_v3 = vpop.eup %2045  ;;  %v2724_v42 = vsub.f32 %v2645_v8, %v889_v63  ;;  %v979_v5 = vadd.f32 1e-05, %v963_v57  ;;  %v1192_v27 = vadd.f32 %v2697_v59, %v1172_v11 }
 0x287   : > { %v1025_v9 = vmul.f32 %v2044_v15, %v1024_v54  ;;  %v1031_v45 = vmul.f32 %v2046_v3, %v978_v35  ;;  %vm1037_vm15 = vweird.f32 %v2046_v3 }
 0x288   : > { %2047 = vrsqrt.f32 %v979_v5  ;;  %v921_v10 = vmul.f32 %v2724_v42, %v2724_v42  ;;  %v1225_v1 = vmul.f32 %v2710_v19, %v1192_v27  ;;  %vm1038_vm1 = vmor %vm1036_vm0, %vm1037_vm15  ;;  %vm1208_vm2 = vcmp.gt.f32.partialorder %v1192_v27, 0.0 }
 0x289   : > { %v1029_v55 = vsel %vm1028_vm14, %v2044_v15, %v1025_v9  ;;  %v1032_v17 = vmul.f32 %v2046_v3, %v1031_v45  ;;  %vm1046_vm5 = vweird.f32 %v979_v5 }
 0x28a   : > { %v1153_v12 = vmul.f32 %v1029_v55, %v2624_v56  ;;  %948 = vadd.xlane.f32.xlu0 %v921_v10  ;;  %v1241_v57 = vsel %vm1208_vm2, %v1192_v27, %v1225_v1  ;;  %v1935_v1 = vld [vmem:[#allocation12 + $0x38] sm:$0xff] }
 0x28b   : > { %v1033_v22 = vmul.f32 0.5, %v1032_v17  ;;  %v864_v8 = vpop.xlane.xlu2 %863  ;;  %v939_v24 = vpop.xlane.xlu0 %938  ;;  %1472 = vmatpush.bf16.msra.mxu3 %v1935_v1 }
 0x28c   : > { %v890_v44 = vmul.f32 %v2598_v23, %v864_v8  ;;  %v1173_v29 = vmul.f32 %v2686_v47, %v1153_v12 }
 0x28d   : > { %v1034_v31 = vsub.f32 1.5, %v1033_v22 }
 0x28e   : > { %v2048_v33 = vpop.eup %2047  ;;  %v2734_v34 = vsub.f32 %v2654_v16, %v890_v44  ;;  %v1193_v15 = vadd.f32 %v2697_v59, %v1173_v29 }
 0x28f   : > { %v1035_v39 = vmul.f32 %v2046_v3, %v1034_v31  ;;  %v1041_v56 = vmul.f32 %v2048_v33, %v979_v5  ;;  %vm1047_vm4 = vweird.f32 %v2048_v33 }
 0x290   : > { %v922_v40 = vmul.f32 %v2734_v34, %v2734_v34  ;;  %vm1209_vm3 = vcmp.gt.f32.partialorder %v1193_v15, 0.0  ;;  %v1226_v50 = vmul.f32 %v2710_v19, %v1193_v15  ;;  %vm1048_vm6 = vmor %vm1046_vm5, %vm1047_vm4 }
 0x291   : > { %v1039_v49 = vsel %vm1038_vm1, %v2046_v3, %v1035_v39  ;;  %v1042_v13 = vmul.f32 %v2048_v33, %v1041_v56 }
 0x292   : > { %v1154_v16 = vmul.f32 %v1039_v49, %v2633_v0  ;;  %950 = vadd.xlane.f32.xlu1 %v922_v40  ;;  %v1242_v35 = vsel %vm1209_vm3, %v1193_v15, %v1226_v50  ;;  %v964_v15 = vmul.f32 %v939_v24, %v2598_v23  ;;  %v1934_v49 = vld [vmem:[#allocation12 + $0x30] sm:$0xff] }
 0x293   : > { %v1043_v51 = vmul.f32 0.5, %v1042_v13  ;;  %v866_v63 = vpop.xlane.xlu0 %865  ;;  %v1256_v54 = vpack.c.bf16 %v1242_v35, %v1241_v57  ;;  %1473 = vmatpush.bf16.msra.mxu3 %v1934_v49  ;;  %v1932_v35 = vld [vmem:[#allocation12 + $0x20] sm:$0xff] }
 0x294   : > { %v891_v2 = vmul.f32 %v2598_v23, %v866_v63  ;;  %v1174_v3 = vmul.f32 %v2686_v47, %v1154_v16  ;;  %v1928_v49 = vld [vmem:[#allocation12] sm:$0xff] }
 0x295   : > { %v1044_v9 = vsub.f32 1.5, %v1043_v51  ;;  %1344 = vmatmul.bf16.gmra.mxu2 %v1256_v54  ;;  %v1933_v51 = vld [vmem:[#allocation12 + $0x28] sm:$0xff] }
 0x296   : > { %v2744_v45 = vsub.f32 %v2660_v18, %v891_v2  ;;  %v1194_v17 = vadd.f32 %v2697_v59, %v1174_v3 }
 0x297   : > { %v1045_v11 = vmul.f32 %v2048_v33, %v1044_v9  ;;  %1474 = vmatpush.bf16.msra.mxu3 %v1933_v51  ;;  %v1931_v9 = vld [vmem:[#allocation12 + $0x18] sm:$0xff] }
 0x298   : > { %v923_v0 = vmul.f32 %v2744_v45, %v2744_v45  ;;  %v1227_v27 = vmul.f32 %v2710_v19, %v1194_v17  ;;  %vm1210_vm7 = vcmp.gt.f32.partialorder %v1194_v17, 0.0 }
 0x299   : > { %v1049_v10 = vsel %vm1048_vm6, %v2048_v33, %v1045_v11 }
 0x29a   : > { %v1155_v55 = vmul.f32 %v1049_v10, %v2642_v7  ;;  %952 = vadd.xlane.f32.xlu2 %v923_v0  ;;  %v1243_v29 = vsel %vm1210_vm7, %v1194_v17, %v1227_v27  ;;  %v1930_v17 = vld [vmem:[#allocation12 + $0x10] sm:$0xff] }
 0x29b   : > { %v868_v12 = vpop.xlane.xlu0 %867  ;;  %1475 = vmatpush.bf16.msra.mxu3 %v1932_v35 }
 0x29c   : > { %v892_v22 = vmul.f32 %v2598_v23, %v868_v12  ;;  %v1175_v18 = vmul.f32 %v2686_v47, %v1155_v55 }
 0x29e   : > { %v2754_v8 = vsub.f32 %v2664_v20, %v892_v22  ;;  %v1195_v5 = vadd.f32 %v2697_v59, %v1175_v18  ;;  %v980_v20 = vadd.f32 1e-05, %v964_v15 }
 0x29f   : > { %1476 = vmatpush.bf16.msra.mxu3 %v1931_v9 }
 0x2a0   : > { %v924_v44 = vmul.f32 %v2754_v8, %v2754_v8  ;;  %vm1211_vm8 = vcmp.gt.f32.partialorder %v1195_v5, 0.0  ;;  %v1228_v7 = vmul.f32 %v2710_v19, %v1195_v5  ;;  %2049 = vrsqrt.f32 %v980_v20 }
 0x2a1   : > { %vm1056_vm10 = vweird.f32 %v980_v20 }
 0x2a2   : > { %954 = vadd.xlane.f32.xlu0 %v924_v44  ;;  %v1244_v31 = vsel %vm1211_vm8, %v1195_v5, %v1228_v7 }
 0x2a3   : > { %v1257_v33 = vpack.c.bf16 %v1244_v31, %v1243_v29  ;;  %1477 = vmatpush.bf16.msra.mxu3 %v1930_v17  ;;  %v1929_v29 = vld [vmem:[#allocation12 + $0x8] sm:$0xff] }
 0x2a5   : > { %1349 = vmatmul.bf16.gmra.mxu2 %v1257_v33 }
 0x2a6   : > { %v2050_v39 = vpop.eup %2049 }
 0x2a7   : > { %v1051_v56 = vmul.f32 %v2050_v39, %v980_v20  ;;  %vm1057_vm9 = vweird.f32 %v2050_v39  ;;  %1478 = vmatpush.bf16.msra.mxu3 %v1929_v29 }
 0x2a8   : > { %vm1058_vm11 = vmor %vm1056_vm10, %vm1057_vm9 }
 0x2a9   : > { %v1052_v40 = vmul.f32 %v2050_v39, %v1051_v56 }
 0x2ab   : > { %v1053_v13 = vmul.f32 0.5, %v1052_v40  ;;  %1479 = vmatpush.bf16.msra.mxu3 %v1928_v49 }
 0x2ad   : > { %v1054_v57 = vsub.f32 1.5, %v1053_v13 }
 0x2af   : > { %v1055_v24 = vmul.f32 %v2050_v39, %v1054_v57 }
 0x2b1   : > { %v1059_v0 = vsel %vm1058_vm11, %v2050_v39, %v1055_v24 }
 0x2b2   : > { %v1156_v12 = vmul.f32 %v1059_v0, %v2651_v14 }
 0x2b4   : > { %v1176_v20 = vmul.f32 %v2686_v47, %v1156_v12 }
 0x2dd   : > { %v941_v50 = vpop.xlane.xlu1 %940 }
 0x2de   : > { %v965_v16 = vmul.f32 %v941_v50, %v2598_v23 }
 0x2e0   : > { %v981_v63 = vadd.f32 1e-05, %v965_v16 }
 0x2e2   : > { %2051 = vrsqrt.f32 %v981_v63  ;;  %vm1066_vm13 = vweird.f32 %v981_v63 }
 0x2e5   : > { %v943_v2 = vpop.xlane.xlu1 %942 }
 0x2e6   : > { %v966_v54 = vmul.f32 %v943_v2, %v2598_v23 }
 0x2e8   : > { %v2052_v3 = vpop.eup %2051  ;;  %v982_v11 = vadd.f32 1e-05, %v966_v54 }
 0x2e9   : > { %v1061_v10 = vmul.f32 %v2052_v3, %v981_v63  ;;  %vm1067_vm12 = vweird.f32 %v2052_v3 }
 0x2ea   : > { %2053 = vrsqrt.f32 %v982_v11  ;;  %vm1068_vm14 = vmor %vm1066_vm13, %vm1067_vm12  ;;  %vm1076_vm0 = vweird.f32 %v982_v11 }
 0x2eb   : > { %v1062_v55 = vmul.f32 %v2052_v3, %v1061_v10 }
 0x2ed   : > { %v1063_v22 = vmul.f32 0.5, %v1062_v55  ;;  %v945_v18 = vpop.xlane.xlu2 %944  ;;  %v870_v5 = vpop.xlane.xlu1 %869 }
 0x2ee   : > { %v967_v27 = vmul.f32 %v945_v18, %v2598_v23  ;;  %v893_v44 = vmul.f32 %v2598_v23, %v870_v5 }
 0x2ef   : > { %v1064_v7 = vsub.f32 1.5, %v1063_v22 }
 0x2f0   : > { %v2054_v31 = vpop.eup %2053  ;;  %v983_v33 = vadd.f32 1e-05, %v967_v27  ;;  %v2768_v15 = vsub.f32 %v2700_v62, %v893_v44  ;;  %v1196_v62 = vadd.f32 %v2697_v59, %v1176_v20 }
 0x2f1   : > { %v1065_v39 = vmul.f32 %v2052_v3, %v1064_v7  ;;  %v1071_v14 = vmul.f32 %v2054_v31, %v982_v11  ;;  %vm1077_vm15 = vweird.f32 %v2054_v31 }
 0x2f2   : > { %2055 = vrsqrt.f32 %v983_v33  ;;  %v925_v56 = vmul.f32 %v2768_v15, %v2768_v15  ;;  %v1229_v54 = vmul.f32 %v2710_v19, %v1196_v62  ;;  %vm1212_vm1 = vcmp.gt.f32.partialorder %v1196_v62, 0.0  ;;  %vm1078_vm2 = vmor %vm1076_vm0, %vm1077_vm15 }
 0x2f3   : > { %v1069_v1 = vsel %vm1068_vm14, %v2052_v3, %v1065_v39  ;;  %v1072_v40 = vmul.f32 %v2054_v31, %v1071_v14  ;;  %vm1086_vm5 = vweird.f32 %v983_v33 }
 0x2f4   : > { %v1157_v13 = vmul.f32 %v1069_v1, %v2671_v58  ;;  %956 = vadd.xlane.f32.xlu1 %v925_v56  ;;  %v1245_v55 = vsel %vm1212_vm1, %v1196_v62, %v1229_v54 }
 0x2f5   : > { %v1073_v50 = vmul.f32 0.5, %v1072_v40  ;;  %v947_v16 = vpop.xlane.xlu2 %946 }
 0x2f6   : > { %v968_v51 = vmul.f32 %v947_v16, %v2598_v23  ;;  %v1177_v63 = vmul.f32 %v2686_v47, %v1157_v13 }
 0x2f7   : > { %v1074_v57 = vsub.f32 1.5, %v1073_v50 }
 0x2f8   : > { %v2056_v35 = vpop.eup %2055  ;;  %v984_v24 = vadd.f32 1e-05, %v968_v51  ;;  %v1197_v2 = vadd.f32 %v2697_v59, %v1177_v63 }
 0x2f9   : > { %v1075_v9 = vmul.f32 %v2054_v31, %v1074_v57  ;;  %v1081_v58 = vmul.f32 %v2056_v35, %v983_v33  ;;  %vm1087_vm4 = vweird.f32 %v2056_v35 }
 0x2fa   : > { %2057 = vrsqrt.f32 %v984_v24  ;;  %vm1213_vm3 = vcmp.gt.f32.partialorder %v1197_v2, 0.0  ;;  %v1230_v3 = vmul.f32 %v2710_v19, %v1197_v2  ;;  %vm1088_vm6 = vmor %vm1086_vm5, %vm1087_vm4  ;;  %vm1096_vm8 = vweird.f32 %v984_v24 }
 0x2fb   : > { %v1079_v0 = vsel %vm1078_vm2, %v2054_v31, %v1075_v9  ;;  %v1082_v10 = vmul.f32 %v2056_v35, %v1081_v58  ;;  %v2793_v9 = vld [vmem:[%s2955_s9] ss:$0 sm:$0xff] }
 0x2fc   : > { %v1246_v17 = vsel %vm1213_vm3, %v1197_v2, %v1230_v3  ;;  %v1158_v12 = vmul.f32 %v1079_v0, %v2678_v37 }
 0x2fd   : > { %v1083_v22 = vmul.f32 0.5, %v1082_v10  ;;  %v949_v18 = vpop.xlane.xlu0 %948  ;;  %v1258_v5 = vpack.c.bf16 %v1246_v17, %v1245_v55 }
 0x2fe   : > { %v969_v27 = vmul.f32 %v949_v18, %v2598_v23  ;;  %v1178_v31 = vmul.f32 %v2686_v47, %v1158_v12 }
 0x2ff   : > { %v1084_v44 = vsub.f32 1.5, %v1083_v22  ;;  %1354 = vmatmul.bf16.gmra.mxu2 %v1258_v5 }
 0x300   : > { %v2058_v11 = vpop.eup %2057  ;;  %v985_v7 = vadd.f32 1e-05, %v969_v27  ;;  %v1198_v40 = vadd.f32 %v2697_v59, %v1178_v31 }
 0x301   : > { %v1085_v29 = vmul.f32 %v2056_v35, %v1084_v44  ;;  %v1091_v20 = vmul.f32 %v2058_v11, %v984_v24  ;;  %vm1097_vm7 = vweird.f32 %v2058_v11 }
 0x302   : > { %2059 = vrsqrt.f32 %v985_v7  ;;  %vm1098_vm9 = vmor %vm1096_vm8, %vm1097_vm7  ;;  %vm1214_vm10 = vcmp.gt.f32.partialorder %v1198_v40, 0.0  ;;  %vm1106_vm13 = vweird.f32 %v985_v7 }
 0x303   : > { %v1089_v39 = vsel %vm1088_vm6, %v2056_v35, %v1085_v29  ;;  %v1092_v14 = vmul.f32 %v2058_v11, %v1091_v20 }
 0x304   : > { %v1159_v37 = vmul.f32 %v1089_v39, %v2691_v28  ;;  %v1231_v28 = vmul.f32 %v2710_v19, %v1198_v40 }
 0x305   : > { %v1093_v56 = vmul.f32 0.5, %v1092_v14  ;;  %v951_v1 = vpop.xlane.xlu1 %950 }
 0x306   : > { %v970_v49 = vmul.f32 %v951_v1, %v2598_v23  ;;  %v1179_v13 = vmul.f32 %v2686_v47, %v1159_v37  ;;  %v1247_v0 = vsel %vm1214_vm10, %v1198_v40, %v1231_v28 }
 0x307   : > { %v1094_v62 = vsub.f32 1.5, %v1093_v56 }
 0x308   : > { %v2060_v33 = vpop.eup %2059  ;;  %v986_v50 = vadd.f32 1e-05, %v970_v49  ;;  %v1199_v16 = vadd.f32 %v2697_v59, %v1179_v13  ;;  %v1340_v57 = vpop.f32.mrf.mxu2 }
 0x309   : > { %v1095_v51 = vmul.f32 %v2058_v11, %v1094_v62  ;;  %v1101_v63 = vmul.f32 %v2060_v33, %v985_v7  ;;  %vm1107_vm12 = vweird.f32 %v2060_v33  ;;  %v1341_v18 = vadd.f32 %v2793_v9, %v1340_v57 }
 0x30a   : > { %2061 = vrsqrt.f32 %v986_v50  ;;  %vm1215_vm11 = vcmp.gt.f32.partialorder %v1199_v16, 0.0  ;;  %v1232_v54 = vmul.f32 %v2710_v19, %v1199_v16  ;;  %vm1108_vm14 = vmor %vm1106_vm13, %vm1107_vm12  ;;  %vm1116_vm0 = vweird.f32 %v986_v50 }
 0x30b   : > { %v1099_v35 = vsel %vm1098_vm9, %v2058_v11, %v1095_v51  ;;  %v1102_v2 = vmul.f32 %v2060_v33, %v1101_v63  ;;  %v1380_v14 = vadd.f32 %v1341_v18, %v2536_v25 }
 0x30c   : > { %v1160_v58 = vmul.f32 %v1099_v35, %v2713_v21  ;;  %v1248_v10 = vsel %vm1215_vm11, %v1199_v16, %v1232_v54 }
 0x30d   : > { %v1103_v24 = vmul.f32 0.5, %v1102_v2  ;;  %v953_v3 = vpop.xlane.xlu2 %952  ;;  %v1259_v17 = vpack.c.bf16 %v1248_v10, %v1247_v0 }
 0x30e   : > { %v971_v55 = vmul.f32 %v953_v3, %v2598_v23  ;;  %v1180_v21 = vmul.f32 %v2686_v47, %v1160_v58 }
 0x30f   : > { %v1104_v12 = vsub.f32 1.5, %v1103_v24  ;;  %1359 = vmatmul.bf16.gmra.mxu2 %v1259_v17 }
 0x310   : > { %v2062_v22 = vpop.eup %2061  ;;  %v987_v5 = vadd.f32 1e-05, %v971_v55  ;;  %v1342_v11 = vpop.f32.mrf.mxu2  ;;  %v1200_v1 = vadd.f32 %v2697_v59, %v1180_v21 }
 0x311   : > { %v1105_v27 = vmul.f32 %v2060_v33, %v1104_v12  ;;  %v1111_v44 = vmul.f32 %v2062_v22, %v986_v50  ;;  %v1343_v29 = vadd.f32 %v2793_v9, %v1342_v11  ;;  %vm1117_vm15 = vweird.f32 %v2062_v22 }
 0x312   : > { %2063 = vrsqrt.f32 %v987_v5  ;;  %v1233_v25 = vmul.f32 %v2710_v19, %v1200_v1  ;;  %vm1118_vm1 = vmor %vm1116_vm0, %vm1117_vm15  ;;  %vm1216_vm2 = vcmp.gt.f32.partialorder %v1200_v1, 0.0  ;;  %vm1126_vm5 = vweird.f32 %v987_v5 }
 0x313   : > { %v1109_v20 = vsel %vm1108_vm14, %v2060_v33, %v1105_v27  ;;  %v1112_v31 = vmul.f32 %v2062_v22, %v1111_v44  ;;  %v1381_v37 = vadd.f32 %v1343_v29, %v2538_v26 }
 0x314   : > { %v1161_v39 = vmul.f32 %v1109_v20, %v2724_v42  ;;  %v1249_v35 = vsel %vm1216_vm2, %v1200_v1, %v1233_v25 }
 0x315   : > { %v1113_v56 = vmul.f32 0.5, %v1112_v31  ;;  %v1396_v7 = vpack.c.bf16 %v1381_v37, %v1380_v14 }
 0x316   : > { %v1181_v40 = vmul.f32 %v2686_v47, %v1161_v39 }
 0x317   : > { %v1114_v49 = vsub.f32 1.5, %v1113_v56  ;;  %1480 = vmatmul.bf16.vlgmr.msra.gmra.mxu3 %v1396_v7  ;;  %v955_v56 = vpop.xlane.xlu0 %954 }
 0x318   : > { %v2064_v13 = vpop.eup %2063  ;;  %v1201_v62 = vadd.f32 %v2697_v59, %v1181_v40  ;;  %v1345_v42 = vpop.f32.mrf.mxu2  ;;  %v972_v1 = vmul.f32 %v955_v56, %v2598_v23 }
 0x319   : > { %v1115_v33 = vmul.f32 %v2062_v22, %v1114_v49  ;;  %v1121_v16 = vmul.f32 %v2064_v13, %v987_v5  ;;  %vm1127_vm4 = vweird.f32 %v2064_v13  ;;  %v1346_v50 = vadd.f32 %v2793_v9, %v1345_v42 }
 0x31a   : > { %vm1217_vm3 = vcmp.gt.f32.partialorder %v1201_v62, 0.0  ;;  %v1234_v63 = vmul.f32 %v2710_v19, %v1201_v62  ;;  %vm1128_vm6 = vmor %vm1126_vm5, %vm1127_vm4  ;;  %v988_v7 = vadd.f32 1e-05, %v972_v1 }
 0x31b   : > { %v1119_v26 = vsel %vm1118_vm1, %v2062_v22, %v1115_v33  ;;  %v1122_v51 = vmul.f32 %v2064_v13, %v1121_v16  ;;  %v1382_v17 = vadd.f32 %v1346_v50, %v2543_v30 }
 0x31c   : > { %v1162_v57 = vmul.f32 %v1119_v26, %v2734_v34  ;;  %v1250_v2 = vsel %vm1217_vm3, %v1201_v62, %v1234_v63  ;;  %2065 = vrsqrt.f32 %v988_v7  ;;  %vm1136_vm10 = vweird.f32 %v988_v7 }
 0x31d   : > { %v1123_v28 = vmul.f32 0.5, %v1122_v51  ;;  %v1260_v54 = vpack.c.bf16 %v1250_v2, %v1249_v35 }
 0x31e   : > { %v1182_v24 = vmul.f32 %v2686_v47, %v1162_v57 }
 0x31f   : > { %v1124_v58 = vsub.f32 1.5, %v1123_v28  ;;  %1364 = vmatmul.bf16.gmra.mxu2 %v1260_v54 }
 0x320   : > { %v1347_v0 = vpop.f32.mrf.mxu2  ;;  %v1202_v22 = vadd.f32 %v2697_v59, %v1182_v24 }
 0x321   : > { %v1125_v3 = vmul.f32 %v2064_v13, %v1124_v58  ;;  %v1348_v10 = vadd.f32 %v2793_v9, %v1347_v0 }
 0x322   : > { %v1235_v5 = vmul.f32 %v2710_v19, %v1202_v22  ;;  %vm1218_vm7 = vcmp.gt.f32.partialorder %v1202_v22, 0.0  ;;  %v2066_v40 = vpop.eup %2065 }
 0x323   : > { %v1129_v55 = vsel %vm1128_vm6, %v2064_v13, %v1125_v3  ;;  %v1383_v12 = vadd.f32 %v1348_v10, %v2545_v32  ;;  %v1131_v49 = vmul.f32 %v2066_v40, %v988_v7  ;;  %vm1137_vm9 = vweird.f32 %v2066_v40 }
 0x324   : > { %v1163_v34 = vmul.f32 %v1129_v55, %v2744_v45  ;;  %v1251_v45 = vsel %vm1218_vm7, %v1202_v22, %v1235_v5  ;;  %vm1138_vm11 = vmor %vm1136_vm10, %vm1137_vm9 }
 0x325   : > { %v1397_v18 = vpack.c.bf16 %v1383_v12, %v1382_v17  ;;  %v1132_v13 = vmul.f32 %v2066_v40, %v1131_v49 }
 0x326   : > { %v1183_v27 = vmul.f32 %v2686_v47, %v1163_v34 }
 0x327   : > { %1485 = vmatmul.bf16.gmra.mxu3 %v1397_v18  ;;  %v1133_v62 = vmul.f32 0.5, %v1132_v13 }
 0x328   : > { %v1203_v44 = vadd.f32 %v2697_v59, %v1183_v27  ;;  %v1350_v11 = vpop.f32.mrf.mxu2 }
 0x329   : > { %v1351_v32 = vadd.f32 %v2793_v9, %v1350_v11  ;;  %v1134_v25 = vsub.f32 1.5, %v1133_v62 }
 0x32a   : > { %vm1219_vm8 = vcmp.gt.f32.partialorder %v1203_v44, 0.0  ;;  %v1236_v21 = vmul.f32 %v2710_v19, %v1203_v44 }
 0x32b   : > { %v1384_v39 = vadd.f32 %v1351_v32, %v2550_v36  ;;  %v1135_v36 = vmul.f32 %v2066_v40, %v1134_v25 }
 0x32c   : > { %v1252_v29 = vsel %vm1219_vm8, %v1203_v44, %v1236_v21  ;;  %v2845_v21 = vstv %s532_s8 }
 0x32d   : > { %v1261_v30 = vpack.c.bf16 %v1252_v29, %v1251_v45  ;;  %v1139_v26 = vsel %vm1138_vm11, %v2066_v40, %v1135_v36 }
 0x32e   : > { %v1164_v57 = vmul.f32 %v1139_v26, %v2754_v8 }
 0x32f   : > { %1369 = vmatmul.bf16.gmra.mxu2 %v1261_v30 }
 0x330   : > { %v1352_v20 = vpop.f32.mrf.mxu2  ;;  %v1184_v2 = vmul.f32 %v2686_v47, %v1164_v57 }
 0x331   : > { %v1353_v31 = vadd.f32 %v2793_v9, %v1352_v20 }
 0x332   : > { %v1204_v50 = vadd.f32 %v2697_v59, %v1184_v2 }
 0x333   : > { %v1385_v14 = vadd.f32 %v1353_v31, %v2552_v38 }
 0x334   : > { %v1237_v8 = vmul.f32 %v2710_v19, %v1204_v50  ;;  %vm1220_vm15 = vcmp.gt.f32.partialorder %v1204_v50, 0.0 }
 0x335   : > { %v1398_v37 = vpack.c.bf16 %v1385_v14, %v1384_v39 }
 0x336   : > { %v1253_v55 = vsel %vm1220_vm15, %v1204_v50, %v1237_v8 }
 0x337   : > { %1490 = vmatmul.bf16.gmra.mxu3 %v1398_v37 }
 0x367   : > { %v957_v33 = vpop.xlane.xlu1 %956 }
 0x368   : > { %v973_v16 = vmul.f32 %v957_v33, %v2598_v23 }
 0x36a   : > { %v989_v42 = vadd.f32 1e-05, %v973_v16 }
 0x36c   : > { %2067 = vrsqrt.f32 %v989_v42  ;;  %vm1146_vm13 = vweird.f32 %v989_v42 }
 0x372   : > { %v2068_v38 = vpop.eup %2067 }
 0x373   : > { %v1141_v51 = vmul.f32 %v2068_v38, %v989_v42  ;;  %vm1147_vm12 = vweird.f32 %v2068_v38 }
 0x374   : > { %vm1148_vm14 = vmor %vm1146_vm13, %vm1147_vm12 }
 0x375   : > { %v1142_v63 = vmul.f32 %v2068_v38, %v1141_v51 }
 0x377   : > { %v1143_v28 = vmul.f32 0.5, %v1142_v63 }
 0x379   : > { %v1144_v35 = vsub.f32 1.5, %v1143_v28 }
 0x37b   : > { %v1145_v54 = vmul.f32 %v2068_v38, %v1144_v35 }
 0x37d   : > { %v1149_v23 = vsel %vm1148_vm14, %v2068_v38, %v1145_v54 }
 0x37e   : > { %v1165_v58 = vmul.f32 %v1149_v23, %v2768_v15 }
 0x380   : > { %v1185_v24 = vmul.f32 %v2686_v47, %v1165_v58 }
 0x382   : > { %v1355_v3 = vpop.f32.mrf.mxu2  ;;  %v1205_v0 = vadd.f32 %v2697_v59, %v1185_v24 }
 0x383   : > { %v1356_v12 = vadd.f32 %v2793_v9, %v1355_v3 }
 0x384   : > { %vm1221_vm0 = vcmp.gt.f32.partialorder %v1205_v0, 0.0  ;;  %v1238_v10 = vmul.f32 %v2710_v19, %v1205_v0  ;;  %v2841_v19 = vld [vmem:[%s2957_s11] ss:$0 sm:$0xff] }
 0x385   : > { %v1386_v47 = vadd.f32 %v1356_v12, %v2556_v41 }
 0x386   : > { %v1254_v34 = vsel %vm1221_vm0, %v1205_v0, %v1238_v10 }
 0x387   : > { %v1262_v17 = vpack.c.bf16 %v1254_v34, %v1253_v55 }
 0x389   : > { %1374 = vmatmul.bf16.gmra.mxu2 %v1262_v17 }
 0x38a   : > { %v1357_v15 = vpop.f32.mrf.mxu2 }
 0x38b   : > { %v1358_v22 = vadd.f32 %v2793_v9, %v1357_v15 }
 0x38d   : > { %v1387_v59 = vadd.f32 %v1358_v22, %v2558_v43 }
 0x38f   : > { %v1399_v18 = vpack.c.bf16 %v1387_v59, %v1386_v47 }
 0x391   : > { %1495 = vmatmul.bf16.gmra.mxu3 %v1399_v18 }
 0x392   : > { %v1360_v27 = vpop.f32.mrf.mxu2 }
 0x393   : > { %v1361_v44 = vadd.f32 %v2793_v9, %v1360_v27 }
 0x395   : > { %v1388_v45 = vadd.f32 %v1361_v44, %v2562_v46 }
 0x39a   : > { %v1362_v5 = vpop.f32.mrf.mxu2  ;;  %v1481_v11 = vpop.f32.mrf.mxu3 }
 0x39b   : > { %v1363_v41 = vadd.f32 %v2793_v9, %v1362_v5  ;;  %v1482_v43 = vadd.f32 %v2841_v19, %v1481_v11 }
 0x39d   : > { %v1389_v29 = vadd.f32 %v1363_v41, %v2564_v48  ;;  %vm1521_vm1 = vcmp.gt.f32.partialorder %v1482_v43, 0.0  ;;  %v1538_v30 = vmul.f32 %v2845_v21, %v1482_v43 }
 0x39f   : > { %v1554_v32 = vsel %vm1521_vm1, %v1482_v43, %v1538_v30  ;;  %v1400_v20 = vpack.c.bf16 %v1389_v29, %v1388_v45 }
 0x3a0   : > { %1570 = vst [vmem:[%s2852_s16] sm:$0xff] %v1554_v32 }
 0x3a1   : > { %1500 = vmatmul.bf16.gmra.mxu3 %v1400_v20 }
 0x3a2   : > { %v1365_v31 = vpop.f32.mrf.mxu2  ;;  %v1483_v39 = vpop.f32.mrf.mxu3 }
 0x3a3   : > { %v1484_v14 = vadd.f32 %v2841_v19, %v1483_v39  ;;  %v1366_v37 = vadd.f32 %v2793_v9, %v1365_v31 }
 0x3a5   : > { %vm1522_vm2 = vcmp.gt.f32.partialorder %v1484_v14, 0.0  ;;  %v1539_v46 = vmul.f32 %v2845_v21, %v1484_v14  ;;  %v1390_v49 = vadd.f32 %v1366_v37, %v2568_v52 }
 0x3a7   : > { %v1555_v48 = vsel %vm1522_vm2, %v1484_v14, %v1539_v46 }
 0x3a8   : > { %1571 = vst [vmem:[%s2852_s16 + $0x8] sm:$0xff] %v1555_v48 }
 0x3aa   : > { %v1367_v56 = vpop.f32.mrf.mxu2  ;;  %v1486_v1 = vpop.f32.mrf.mxu3 }
 0x3ab   : > { %v1368_v7 = vadd.f32 %v2793_v9, %v1367_v56  ;;  %v1487_v40 = vadd.f32 %v2841_v19, %v1486_v1 }
 0x3ad   : > { %v1391_v13 = vadd.f32 %v1368_v7, %v2570_v53  ;;  %vm1523_vm3 = vcmp.gt.f32.partialorder %v1487_v40, 0.0  ;;  %v1540_v62 = vmul.f32 %v2845_v21, %v1487_v40 }
 0x3af   : > { %v1556_v33 = vsel %vm1523_vm3, %v1487_v40, %v1540_v62  ;;  %v1401_v16 = vpack.c.bf16 %v1391_v13, %v1390_v49 }
 0x3b0   : > { %1572 = vst [vmem:[%s2852_s16 + $0x10] sm:$0xff] %v1556_v33 }
 0x3b1   : > { %1505 = vmatmul.bf16.gmra.mxu3 %v1401_v16 }
 0x3b2   : > { %v1370_v42 = vpop.f32.mrf.mxu2  ;;  %v1488_v25 = vpop.f32.mrf.mxu3 }
 0x3b3   : > { %v1489_v36 = vadd.f32 %v2841_v19, %v1488_v25  ;;  %v1371_v52 = vadd.f32 %v2793_v9, %v1370_v42 }
 0x3b5   : > { %vm1524_vm4 = vcmp.gt.f32.partialorder %v1489_v36, 0.0  ;;  %v1541_v38 = vmul.f32 %v2845_v21, %v1489_v36  ;;  %v1392_v28 = vadd.f32 %v1371_v52, %v2580_v60 }
 0x3b7   : > { %v1557_v26 = vsel %vm1524_vm4, %v1489_v36, %v1541_v38 }
 0x3b8   : > { %1573 = vst [vmem:[%s2852_s16 + $0x18] sm:$0xff] %v1557_v26 }
 0x3ba   : > { %v1372_v53 = vpop.f32.mrf.mxu2  ;;  %v1491_v51 = vpop.f32.mrf.mxu3 }
 0x3bb   : > { %v1373_v63 = vadd.f32 %v2793_v9, %v1372_v53  ;;  %v1492_v57 = vadd.f32 %v2841_v19, %v1491_v51 }
 0x3bd   : > { %v1393_v35 = vadd.f32 %v1373_v63, %v2582_v61  ;;  %vm1525_vm5 = vcmp.gt.f32.partialorder %v1492_v57, 0.0  ;;  %v1542_v2 = vmul.f32 %v2845_v21, %v1492_v57 }
 0x3bf   : > { %v1558_v54 = vsel %vm1525_vm5, %v1492_v57, %v1542_v2  ;;  %v1402_v23 = vpack.c.bf16 %v1393_v35, %v1392_v28 }
 0x3c0   : > { %1574 = vst [vmem:[%s2852_s16 + $0x20] sm:$0xff] %v1558_v54 }
 0x3c1   : > { %1510 = vmatmul.bf16.gmra.mxu3 %v1402_v23 }
 0x3c2   : > { %v1493_v58 = vpop.f32.mrf.mxu3 }
 0x3c3   : > { %v1494_v50 = vadd.f32 %v2841_v19, %v1493_v58 }
 0x3c5   : > { %vm1526_vm6 = vcmp.gt.f32.partialorder %v1494_v50, 0.0  ;;  %v1543_v24 = vmul.f32 %v2845_v21, %v1494_v50 }
 0x3c7   : > { %v1559_v3 = vsel %vm1526_vm6, %v1494_v50, %v1543_v24 }
 0x3c8   : > { %1575 = vst [vmem:[%s2852_s16 + $0x28] sm:$0xff] %v1559_v3 }
 0x40c   : > { %v1375_v0 = vpop.f32.mrf.mxu2 }
 0x40d   : > { %v1376_v60 = vadd.f32 %v2793_v9, %v1375_v0 }
 0x40f   : > { %v1394_v34 = vadd.f32 %v1376_v60, %v2588_v4 }
 0x414   : > { %v1377_v61 = vpop.f32.mrf.mxu2  ;;  %v1496_v8 = vpop.f32.mrf.mxu3 }
 0x415   : > { %v1378_v10 = vadd.f32 %v2793_v9, %v1377_v61  ;;  %v1497_v55 = vadd.f32 %v2841_v19, %v1496_v8 }
 0x417   : > { %v1395_v17 = vadd.f32 %v1378_v10, %v2590_v6  ;;  %vm1527_vm7 = vcmp.gt.f32.partialorder %v1497_v55, 0.0  ;;  %v1544_v12 = vmul.f32 %v2845_v21, %v1497_v55 }
 0x419   : > { %v1560_v15 = vsel %vm1527_vm7, %v1497_v55, %v1544_v12  ;;  %v1403_v22 = vpack.c.bf16 %v1395_v17, %v1394_v34 }
 0x41a   : > { %1576 = vst [vmem:[%s2852_s16 + $0x30] sm:$0xff] %v1560_v15 }
 0x41b   : > { %1515 = vmatmul.bf16.gmra.mxu3 %v1403_v22 }
 0x41c   : > { %v1498_v47 = vpop.f32.mrf.mxu3 }
 0x41d   : > { %v1499_v59 = vadd.f32 %v2841_v19, %v1498_v47 }
 0x41f   : > { %vm1528_vm8 = vcmp.gt.f32.partialorder %v1499_v59, 0.0  ;;  %v1545_v9 = vmul.f32 %v2845_v21, %v1499_v59 }
 0x421   : > { %v1561_v18 = vsel %vm1528_vm8, %v1499_v59, %v1545_v9 }
 0x422   : > { %1577 = vst [vmem:[%s2852_s16 + $0x38] sm:$0xff] %v1561_v18 }
 0x424   : > { %v1501_v4 = vpop.f32.mrf.mxu3 }
 0x425   : > { %v1502_v6 = vadd.f32 %v2841_v19, %v1501_v4 }
 0x427   : > { %vm1529_vm9 = vcmp.gt.f32.partialorder %v1502_v6, 0.0  ;;  %v1546_v27 = vmul.f32 %v2845_v21, %v1502_v6 }
 0x429   : > { %v1562_v44 = vsel %vm1529_vm9, %v1502_v6, %v1546_v27 }
 0x42a   : > { %1578 = vst [vmem:[%s2852_s16 + $0x40] sm:$0xff] %v1562_v44 }
 0x42c   : > { %v1503_v5 = vpop.f32.mrf.mxu3 }
 0x42d   : > { %v1504_v11 = vadd.f32 %v2841_v19, %v1503_v5 }
 0x42f   : > { %vm1530_vm10 = vcmp.gt.f32.partialorder %v1504_v11, 0.0  ;;  %v1547_v41 = vmul.f32 %v2845_v21, %v1504_v11 }
 0x431   : > { %v1563_v43 = vsel %vm1530_vm10, %v1504_v11, %v1547_v41 }
 0x432   : > { %1579 = vst [vmem:[%s2852_s16 + $0x48] sm:$0xff] %v1563_v43 }
 0x434   : > { %v1506_v45 = vpop.f32.mrf.mxu3 }
 0x435   : > { %v1507_v29 = vadd.f32 %v2841_v19, %v1506_v45 }
 0x437   : > { %vm1531_vm11 = vcmp.gt.f32.partialorder %v1507_v29, 0.0  ;;  %v1548_v30 = vmul.f32 %v2845_v21, %v1507_v29 }
 0x439   : > { %v1564_v32 = vsel %vm1531_vm11, %v1507_v29, %v1548_v30 }
 0x43a   : > { %1580 = vst [vmem:[%s2852_s16 + $0x50] sm:$0xff] %v1564_v32 }
 0x43c   : > { %v1508_v20 = vpop.f32.mrf.mxu3 }
 0x43d   : > { %v1509_v31 = vadd.f32 %v2841_v19, %v1508_v20 }
 0x43f   : > { %vm1532_vm12 = vcmp.gt.f32.partialorder %v1509_v31, 0.0  ;;  %v1549_v39 = vmul.f32 %v2845_v21, %v1509_v31 }
 0x441   : > { %v1565_v14 = vsel %vm1532_vm12, %v1509_v31, %v1549_v39 }
 0x442   : > { %1581 = vst [vmem:[%s2852_s16 + $0x58] sm:$0xff] %v1565_v14 }
 0x444   : > { %v1511_v46 = vpop.f32.mrf.mxu3 }
 0x445   : > { %v1512_v48 = vadd.f32 %v2841_v19, %v1511_v46 }
 0x447   : > { %vm1533_vm13 = vcmp.gt.f32.partialorder %v1512_v48, 0.0  ;;  %v1550_v37 = vmul.f32 %v2845_v21, %v1512_v48 }
 0x449   : > { %v1566_v56 = vsel %vm1533_vm13, %v1512_v48, %v1550_v37 }
 0x44a   : > { %1582 = vst [vmem:[%s2852_s16 + $0x60] sm:$0xff] %v1566_v56 }
 0x44c   : > { %v1513_v1 = vpop.f32.mrf.mxu3 }
 0x44d   : > { %v1514_v7 = vadd.f32 %v2841_v19, %v1513_v1 }
 0x44f   : > { %vm1534_vm14 = vcmp.gt.f32.partialorder %v1514_v7, 0.0  ;;  %v1551_v40 = vmul.f32 %v2845_v21, %v1514_v7 }
 0x451   : > { %v1567_v49 = vsel %vm1534_vm14, %v1514_v7, %v1551_v40 }
 0x452   : > { %1583 = vst [vmem:[%s2852_s16 + $0x68] sm:$0xff] %v1567_v49 }
 0x49e   : > { %v1516_v13 = vpop.f32.mrf.mxu3 }
 0x49f   : > { %v1517_v62 = vadd.f32 %v2841_v19, %v1516_v13 }
 0x4a1   : > { %vm1535_vm15 = vcmp.gt.f32.partialorder %v1517_v62, 0.0  ;;  %v1552_v33 = vmul.f32 %v2845_v21, %v1517_v62 }
 0x4a3   : > { %v1568_v16 = vsel %vm1535_vm15, %v1517_v62, %v1552_v33 }
 0x4a4   : > { %1584 = vst [vmem:[%s2852_s16 + $0x70] sm:$0xff] %v1568_v16 }
 0x4a6   : > { %v1518_v42 = vpop.f32.mrf.mxu3 }
 0x4a7   : > { %v1519_v25 = vadd.f32 %v2841_v19, %v1518_v42 }
 0x4a9   : > { %vm1536_vm0 = vcmp.gt.f32.partialorder %v1519_v25, 0.0  ;;  %v1553_v36 = vmul.f32 %v2845_v21, %v1519_v25 }
 0x4ab   : > { %v1569_v38 = vsel %vm1536_vm0, %v1519_v25, %v1553_v36 }
 0x4ac   : > { %1585 = vst [vmem:[%s2852_s16 + $0x78] sm:$0xff] %v1569_v38 }
 0x4ad   : > { %2246 = shalt.err (!%p2243_p10)
}
 0x4ae   : > { %s2302_s25 = smov 128   ;;  %s2303_s16 = smov 8  }
 0x4af   : > { %1955 = dma.vmem_to_hbm [thread:$0]  (%p2476_p3), %s1600_s28, 2048, %s1602_s1, %s1587_s7, %s2302_s25, %s2302_s25, %s2303_s16  }
 0x4b0 PF: > { %s1616_s12 = sand.u32 1, %s2281_s29   ;;  %p2981_p12 = scmp.ge.s32.totalorder %s2293_s15, 2 }
 0x4b1   : > { %s1617_s20 = scalar_lea.sflag [#allocation6], %s1616_s12 }
 0x4b2   : > { %p1975_p13 = pnand %p2981_p12, %p2415_p6 }
 0x4b4   : > { %p1976_p0 = pneg %p1975_p13 }
 0x4b6   : > { %2276 = dma.done.wait (%p1976_p0), %s1617_s20, 2048  }
 0x4b7   : > { %2278 = vsyncadd (%p1976_p0), %s1617_s20, 4294965248  ;;  %p30_p5 = scmp.ge.s32.totalorder %s2466_s19, 4   ;;  %s2982_s29 = smov %s2285_s30 }
 0x4b8   : > { %s2983_s30 = smov %s2289_s14  ;;  %s2984_s14 = smov %s2482_s23 }
 0x4b9   : > { %s2985_s15 = smov %s2466_s19  ;;  %32 = sbr.rel (!%p30_p5) target bundleno = 14 (0xe), region = 133 }
 0x4be   :  { %1623 = vsyncpa [#allocation5], 1 }
 0x4bf   :  { %1625 = vsyncpa [#allocation5 + $0x1], 1 }
 0x4c0   :  { %1626 = vsyncpa [#allocation8], 1 }
 0x4c1   :  { %1627 = vsyncpa [#allocation11], 1 }
 0x4c2   :  { %1628 = vsyncpa [#allocation6], 1 }
 0x4c3   :  { %1630 = vsyncpa [#allocation6 + $0x1], 1 }

</bundles_post_ra>
